<compile_context>
chip_gen: v7x
topology: tpu7x:2x2x1
jax: 0.10.0
libtpu: 0.0.40
codegen_flags: <defaults>
</compile_context>

<pallas_src>
import jax
import jax.numpy as jnp
from jax.experimental import pallas as pl
from jax.experimental.pallas import tpu as pltpu

BN_EPS = 1e-5
C = 64


def _vmem_capacity_bytes():
    try:
        return int(pltpu.get_tpu_info().vmem_capacity_bytes)
    except Exception:
        return 64 << 20  # conservative default (v7x physical VMEM)


def _pick_tile(hw, max_tile=8192):
    """Largest pixel tile (multiple of 128) that divides H*W, capped at max_tile."""
    if hw % 128 != 0:
        return hw  # full-extent block is always legal
    t = min(max_tile, hw)
    t -= t % 128
    while hw % t != 0:
        t -= 128
    return t


# ------------------------------ fused single-pass -----------------------------
def _make_fused_kernel(total_count):
    inv_count = 1.0 / float(total_count)

    def kernel(x_ref, w1_ref, b1_ref, g_ref, bt_ref, w2c_ref, b2_ref, o_ref,
               h_store, sum_acc, sq_acc, shift_s, scale_s, bias_s):
        p = pl.program_id(0)
        n = pl.program_id(1)
        t = pl.program_id(2)
        idx = n * pl.num_programs(2) + t
        first = (n == 0) & (t == 0)

        # phase 0: h = W1 @ x + b1 (streams x once), stash h in VMEM, BN stats.
        @pl.when(p == 0)
        def _phase0():
            h = jnp.dot(w1_ref[...], x_ref[0],
                        preferred_element_type=jnp.float32) + b1_ref[...]   # (C, T)

            @pl.when(first)
            def _():
                # Shifted sum-of-squares: no E[h^2]-E[h]^2 cancellation.
                shift_s[...] = jnp.mean(h, axis=1, keepdims=True)
                sum_acc[...] = jnp.zeros((C, 1), jnp.float32)
                sq_acc[...] = jnp.zeros((C, 1), jnp.float32)

            d = h - shift_s[...]
            sum_acc[...] += jnp.sum(h, axis=1, keepdims=True)
            sq_acc[...] += jnp.sum(d * d, axis=1, keepdims=True)
            h_store[idx] = h.astype(h_store.dtype)

        # phase 1: fold BN, then per-channel affine + ReLU + conv2 + sigmoid,
        # reading h from the resident VMEM scratch (no second HBM read of x).
        @pl.when(p == 1)
        def _phase1():
            @pl.when(first)
            def _():
                mean = sum_acc[...] * inv_count
                var = jnp.maximum(
                    sq_acc[...] * inv_count - (mean - shift_s[...]) ** 2, 0.0)
                sc = g_ref[...] * jax.lax.rsqrt(var + BN_EPS)
                scale_s[...] = sc
                bias_s[...] = bt_ref[...] - sc * mean

            h = h_store[idx].astype(jnp.float32)
            y = jnp.maximum(h * scale_s[...] + bias_s[...], 0.0)           # (C, T)
            # conv2 (64 -> 1) on VPU/XLU: broadcast multiply + sublane reduce.
            z = jnp.sum(y * w2c_ref[...], axis=0, keepdims=True) + b2_ref[...]
            o_ref[...] = jax.nn.sigmoid(z).reshape(o_ref.shape)            # lane-dense

    return kernel


# ---------------------- two-pass fallback: phase 1 (stats) --------------------
def _stats_kernel(x_ref, w1_ref, b1_ref, sum_ref, sq_ref, shift_ref):
    # Per-batch partial sums: output blocks are indexed by the batch grid axis
    # only, so the batch axis can be "parallel" (v7x megacore) and accumulation
    # happens directly in the resident output blocks (no scratch copies).
    t = pl.program_id(1)
    h = jnp.dot(w1_ref[...], x_ref[0],
                preferred_element_type=jnp.float32) + b1_ref[...]           # (C, T)

    @pl.when(t == 0)
    def _():
        shift_ref[0] = jnp.mean(h, axis=1, keepdims=True)
        sum_ref[0] = jnp.zeros((C, 1), jnp.float32)
        sq_ref[0] = jnp.zeros((C, 1), jnp.float32)

    d = h - shift_ref[0]
    sum_ref[0] += jnp.sum(h, axis=1, keepdims=True)
    sq_ref[0] += jnp.sum(d * d, axis=1, keepdims=True)


# ------------- two-pass fallback: phase 2 (folded BN conv -> ... ) ------------
def _apply_kernel(x_ref, w1f_ref, b1f_ref, w2c_ref, b2_ref, o_ref):
    h = jnp.dot(w1f_ref[...], x_ref[0],
                preferred_element_type=jnp.float32) + b1f_ref[...]          # (C, T)
    h = jnp.maximum(h, 0.0)                                                 # ReLU
    # conv2 (64 -> 1) on VPU/XLU instead of an M=1 MXU matmul.
    z = jnp.sum(h * w2c_ref[...], axis=0, keepdims=True) + b2_ref[...]      # (1, T)
    o_ref[...] = jax.nn.sigmoid(z).reshape(o_ref.shape)                     # lane-dense


def detection_branch(x_nchw, params, *, max_tile=8192, h_dtype=jnp.float32,
                     force_two_pass=False):
    """x_nchw: (N, 64, H, W) float32. Returns (N, 1, H, W) float32."""
    w1, b1, gamma, beta, w2, b2 = params
    N, Cin, H, W = x_nchw.shape
    assert Cin == C
    HW = H * W
    tile = _pick_tile(HW, max_tile)
    nT = HW // tile

    x3d = x_nchw.reshape(N, C, HW)          # free view: channels on sublanes
    w1_r = w1.reshape(C, C)                 # (out, in)
    b1_r = b1.reshape(C, 1)
    g_r = gamma.reshape(C, 1)
    bt_r = beta.reshape(C, 1)
    w2c = w2.reshape(C, 1)                  # column, for the sublane reduction
    b2_r = b2.reshape(1, 1)

    vmem_cap = _vmem_capacity_bytes()

    # ------------------ fused single-pass (x read from HBM once) --------------
    h_bytes = N * HW * C * jnp.dtype(h_dtype).itemsize
    stream_bytes = 2 * C * tile * 4 + 2 * tile * 4 + 8 * C * 4
    fused_need = h_bytes + stream_bytes + (2 << 20)
    use_fused = (not force_two_pass) and fused_need <= int(0.8 * vmem_cap)

    if use_fused:
        const = lambda shape: pl.BlockSpec(shape, lambda p, n, t: (0,) * len(shape))
        out3d = pl.pallas_call(
            _make_fused_kernel(N * HW),
            out_shape=jax.ShapeDtypeStruct((N, 1, HW), jnp.float32),
            grid=(2, N, nT),
            in_specs=[
                # x is streamed only during phase 0; phase 1 pins block (0,0,0).
                pl.BlockSpec((1, C, tile),
                             lambda p, n, t: (n * (1 - p), 0, t * (1 - p))),
                const((C, C)), const((C, 1)), const((C, 1)), const((C, 1)),
                const((C, 1)), const((1, 1)),
            ],
            # output is written only during phase 1; phase 0 pins block (0,0,0).
            out_specs=pl.BlockSpec((1, 1, tile),
                                   lambda p, n, t: (n * p, 0, t * p)),
            scratch_shapes=[
                pltpu.VMEM((N * nT, C, tile), h_dtype),   # resident h
                pltpu.VMEM((C, 1), jnp.float32),          # sum
                pltpu.VMEM((C, 1), jnp.float32),          # shifted sum of squares
                pltpu.VMEM((C, 1), jnp.float32),          # shift
                pltpu.VMEM((C, 1), jnp.float32),          # folded BN scale
                pltpu.VMEM((C, 1), jnp.float32),          # folded BN bias
            ],
            compiler_params=pltpu.CompilerParams(
                # The phase axis couples all (n, t) steps -> fully sequential.
                dimension_semantics=("arbitrary", "arbitrary", "arbitrary"),
                vmem_limit_bytes=min(int(0.9 * vmem_cap),
                                     max(32 << 20, fused_need + (4 << 20)))),
        )(x3d, w1_r, b1_r, g_r, bt_r, w2c, b2_r)
        return out3d.reshape(N, 1, H, W)

    # --------------------------- two-pass fallback -----------------------------
    # Per-generation VMEM budget: ~32 MiB on v7x, ~64 MiB on v5e/v6e.
    vmem_2p = max(32 << 20, min(100 << 20, int(0.5 * vmem_cap)))
    grid = (N, nT)
    x_spec = pl.BlockSpec((1, C, tile), lambda n, t: (n, 0, t))
    const = lambda shape: pl.BlockSpec(shape, lambda n, t: (0,) * len(shape))
    per_batch = pl.BlockSpec((1, C, 1), lambda n, t: (n, 0, 0))

    # phase 1: per-batch partial BN statistics (batch axis "parallel").
    sums, sqs, shifts = pl.pallas_call(
        _stats_kernel,
        out_shape=(jax.ShapeDtypeStruct((N, C, 1), jnp.float32),
                   jax.ShapeDtypeStruct((N, C, 1), jnp.float32),
                   jax.ShapeDtypeStruct((N, C, 1), jnp.float32)),
        grid=grid,
        in_specs=[x_spec, const((C, C)), const((C, 1))],
        out_specs=(per_batch, per_batch, per_batch),
        compiler_params=pltpu.CompilerParams(
            dimension_semantics=("parallel", "arbitrary"),
            vmem_limit_bytes=vmem_2p),
    )(x3d, w1_r, b1_r)

    # Pool per-batch (shifted) statistics -> global mean/var; fold BN into conv1.
    cnt = jnp.float32(HW)
    mu_n = sums / cnt                                        # (N, C, 1)
    var_n = jnp.maximum(sqs / cnt - (mu_n - shifts) ** 2, 0.0)
    mean = jnp.mean(mu_n, axis=0)                            # (C, 1)
    var = jnp.mean(var_n + (mu_n - mean) ** 2, axis=0)       # (C, 1), biased
    scale = g_r * jax.lax.rsqrt(var + BN_EPS)
    w1f = w1_r * scale                                       # per-out-channel row scale
    b1f = (b1_r - mean) * scale + bt_r

    # phase 2: matmul + bias + ReLU + VPU conv2 + sigmoid (fully parallel grid).
    out3d = pl.pallas_call(
        _apply_kernel,
        out_shape=jax.ShapeDtypeStruct((N, 1, HW), jnp.float32),
        grid=grid,
        in_specs=[x_spec, const((C, C)), const((C, 1)), const((C, 1)),
                  const((1, 1))],
        out_specs=pl.BlockSpec((1, 1, tile), lambda n, t: (n, 0, t)),
        compiler_params=pltpu.CompilerParams(
            dimension_semantics=("parallel", "parallel"),
            vmem_limit_bytes=vmem_2p),
    )(x3d, w1f, b1f, w2c, b2_r)
    return out3d.reshape(N, 1, H, W)


def init_params(key):
    k1, k2, k3, k4, k5, k6 = jax.random.split(key, 6)
    # Conv2d(64, 64, 1): weight (64, 64, 1, 1) -> (64, 64), bias (64,)
    w1 = jax.random.normal(k1, (C, C), jnp.float32) * 0.05
    b1 = jax.random.normal(k2, (C,), jnp.float32) * 0.05
    # BatchNorm2d(64) affine params (perturbed from default to exercise the math)
    gamma = 1.0 + 0.1 * jax.random.normal(k5, (C,), jnp.float32)
    beta = 0.1 * jax.random.normal(k6, (C,), jnp.float32)
    # Conv2d(64, 1, 1): weight (1, 64, 1, 1) -> (1, 64), bias (1,)
    w2 = jax.random.normal(k3, (1, C), jnp.float32) * 0.05
    b2 = jax.random.normal(k4, (1,), jnp.float32) * 0.05
    return (w1, b1, gamma, beta, w2, b2)


def reference(x_nchw, params):
    """Pure-JAX reference of the PyTorch forward (training-mode BatchNorm)."""
    w1, b1, gamma, beta, w2, b2 = params
    N, Cc, H, W = x_nchw.shape
    x = jnp.transpose(x_nchw, (0, 2, 3, 1)).reshape(-1, Cc)
    h = x @ w1.T + b1
    mean = jnp.mean(h, axis=0, keepdims=True)
    var = jnp.mean((h - mean) ** 2, axis=0, keepdims=True)
    h = (h - mean) / jnp.sqrt(var + BN_EPS) * gamma + beta
    h = jnp.maximum(h, 0.0)
    z = jax.nn.sigmoid(h @ w2.T + b2)
    return jnp.transpose(z.reshape(N, H, W, 1), (0, 3, 1, 2))


if __name__ == "__main__":
    key = jax.random.PRNGKey(0)
    kx, kp = jax.random.split(key)
    x = jax.random.normal(kx, (2, 64, 16, 16), jnp.float32)
    params = init_params(kp)
    ref = reference(x, params)

    # Fused single-pass path; max_tile=128 -> 128-pixel tiles, grid (2, 2, 2):
    # exercises the cross-tile statistics accumulation and both phases.
    out_fused = jax.block_until_ready(detection_branch(x, params, max_tile=128))
    assert out_fused.shape == (2, 1, 16, 16)
    err_f = float(jnp.max(jnp.abs(out_fused - ref)))
    assert jnp.allclose(out_fused, ref, atol=1e-4, rtol=1e-4), err_f

    # Two-pass fallback path (used when the resident h does not fit VMEM).
    out_2p = jax.block_until_ready(
        detection_branch(x, params, max_tile=128, force_two_pass=True))
    err_2 = float(jnp.max(jnp.abs(out_2p - ref)))
    assert jnp.allclose(out_2p, ref, atol=1e-4, rtol=1e-4), err_2

    print("KERNEL_OK")
</pallas_src>

<mosaic_0001>
module attributes {stable_mosaic.version = 11 : i64} {
  func.func @kernel(%arg0: i32, %arg1: i32, %arg2: i32, %arg3: memref<1x64x128xf32, #tpu.memory_space<vmem>>, %arg4: memref<64x64xf32, #tpu.memory_space<vmem>>, %arg5: memref<64x1xf32, #tpu.memory_space<vmem>>, %arg6: memref<64x1xf32, #tpu.memory_space<vmem>>, %arg7: memref<64x1xf32, #tpu.memory_space<vmem>>, %arg8: memref<64x1xf32, #tpu.memory_space<vmem>>, %arg9: memref<1x1xf32, #tpu.memory_space<vmem>>, %arg10: memref<1x1x128xf32, #tpu.memory_space<vmem>>, %arg11: memref<4x64x128xf32, #tpu.memory_space<vmem>>, %arg12: memref<64x1xf32, #tpu.memory_space<vmem>>, %arg13: memref<64x1xf32, #tpu.memory_space<vmem>>, %arg14: memref<64x1xf32, #tpu.memory_space<vmem>>, %arg15: memref<64x1xf32, #tpu.memory_space<vmem>>, %arg16: memref<64x1xf32, #tpu.memory_space<vmem>>) attributes {dimension_semantics = [#tpu.dimension_semantics<arbitrary>, #tpu.dimension_semantics<arbitrary>, #tpu.dimension_semantics<arbitrary>], iteration_bounds = array<i64: 2, 2, 2>, scalar_prefetch = 0 : i64, scratch_operands = 6 : i64, tpu.core_type = #tpu.core_type<tc>, window_params = [{transform_indices = @transform_0, window_bounds = array<i64: 1, 64, 128>}, {pipeline_mode = #tpu.pipeline_mode<synchronous>, transform_indices = @transform_1, window_bounds = array<i64: 64, 64>}, {pipeline_mode = #tpu.pipeline_mode<synchronous>, transform_indices = @transform_2, window_bounds = array<i64: 64, 1>}, {pipeline_mode = #tpu.pipeline_mode<synchronous>, transform_indices = @transform_3, window_bounds = array<i64: 64, 1>}, {pipeline_mode = #tpu.pipeline_mode<synchronous>, transform_indices = @transform_4, window_bounds = array<i64: 64, 1>}, {pipeline_mode = #tpu.pipeline_mode<synchronous>, transform_indices = @transform_5, window_bounds = array<i64: 64, 1>}, {pipeline_mode = #tpu.pipeline_mode<synchronous>, transform_indices = @transform_6, window_bounds = array<i64: 1, 1>}, {transform_indices = @transform_7, window_bounds = array<i64: 1, 1, 128>}]} {
    %c2_i32 = arith.constant 2 : i32
    %0 = arith.muli %arg1, %c2_i32 : i32
    %1 = arith.addi %0, %arg2 : i32
    %c0_i32 = arith.constant 0 : i32
    %2 = arith.cmpi eq, %arg1, %c0_i32 : i32
    %c0_i32_0 = arith.constant 0 : i32
    %3 = arith.cmpi eq, %arg2, %c0_i32_0 : i32
    %4 = arith.andi %2, %3 : i1
    %c0_i32_1 = arith.constant 0 : i32
    %5 = arith.cmpi eq, %arg0, %c0_i32_1 : i32
    %6 = arith.extui %5 : i1 to i32
    %c0_i32_2 = arith.constant 0 : i32
    %7 = arith.cmpi ne, %6, %c0_i32_2 : i32
    scf.if %7 {
      %c0 = arith.constant 0 : index
      %c0_4 = arith.constant 0 : index
      %11 = vector.load %arg4[%c0, %c0_4] : memref<64x64xf32, #tpu.memory_space<vmem>>, vector<64x64xf32>
      %c0_5 = arith.constant 0 : index
      %c0_6 = arith.constant 0 : index
      %c0_7 = arith.constant 0 : index
      %12 = vector.load %arg3[%c0_5, %c0_6, %c0_7] : memref<1x64x128xf32, #tpu.memory_space<vmem>>, vector<1x64x128xf32>
      %13 = vector.shape_cast %12 : vector<1x64x128xf32> to vector<64x128xf32>
      %cst = arith.constant dense<0.000000e+00> : vector<64x128xf32>
      %14 = tpu.matmul %11, %13, %cst {dimension_numbers = #tpu.dot_dimension_numbers<[1], [0], [0], [1], [0, 0, 1, 1], [], []>} : vector<64x64xf32>, vector<64x128xf32>, vector<64x128xf32> -> vector<64x128xf32>
      %c0_8 = arith.constant 0 : index
      %c0_9 = arith.constant 0 : index
      %15 = vector.load %arg5[%c0_8, %c0_9] : memref<64x1xf32, #tpu.memory_space<vmem>>, vector<64x1xf32>
      %16 = vector.broadcast %15 : vector<64x1xf32> to vector<64x128xf32>
      %17 = arith.addf %14, %16 : vector<64x128xf32>
      %18 = arith.extui %4 : i1 to i32
      %c0_i32_10 = arith.constant 0 : i32
      %19 = arith.cmpi ne, %18, %c0_i32_10 : i32
      scf.if %19 {
        %cst_25 = arith.constant dense<0.000000e+00> : vector<64xf32>
        %38 = vector.multi_reduction <add>, %17, %cst_25 [1] : vector<64x128xf32> to vector<64xf32>
        %39 = vector.shape_cast %38 : vector<64xf32> to vector<64x1xf32>
        %cst_26 = arith.constant 1.280000e+02 : f32
        %40 = vector.broadcast %cst_26 : f32 to vector<64x1xf32>
        %41 = arith.divf %39, %40 : vector<64x1xf32>
        %c0_27 = arith.constant 0 : index
        %c0_28 = arith.constant 0 : index
        %42 = vector.load %arg14[%c0_27, %c0_28] : memref<64x1xf32, #tpu.memory_space<vmem>>, vector<64x1xf32>
        tpu.vector_store %arg14[%c0_27, %c0_28], %41 {strides = array<i32>} : memref<64x1xf32, #tpu.memory_space<vmem>>, vector<64x1xf32>,
        %cst_29 = arith.constant 0.000000e+00 : f32
        %43 = vector.broadcast %cst_29 : f32 to vector<64x1xf32>
        %c0_30 = arith.constant 0 : index
        %c0_31 = arith.constant 0 : index
        %44 = vector.load %arg12[%c0_30, %c0_31] : memref<64x1xf32, #tpu.memory_space<vmem>>, vector<64x1xf32>
        tpu.vector_store %arg12[%c0_30, %c0_31], %43 {strides = array<i32>} : memref<64x1xf32, #tpu.memory_space<vmem>>, vector<64x1xf32>,
        %cst_32 = arith.constant 0.000000e+00 : f32
        %45 = vector.broadcast %cst_32 : f32 to vector<64x1xf32>
        %c0_33 = arith.constant 0 : index
        %c0_34 = arith.constant 0 : index
        %46 = vector.load %arg13[%c0_33, %c0_34] : memref<64x1xf32, #tpu.memory_space<vmem>>, vector<64x1xf32>
        tpu.vector_store %arg13[%c0_33, %c0_34], %45 {strides = array<i32>} : memref<64x1xf32, #tpu.memory_space<vmem>>, vector<64x1xf32>,
      } else {
      }
      %c0_11 = arith.constant 0 : index
      %c0_12 = arith.constant 0 : index
      %20 = vector.load %arg14[%c0_11, %c0_12] : memref<64x1xf32, #tpu.memory_space<vmem>>, vector<64x1xf32>
      %21 = vector.broadcast %20 : vector<64x1xf32> to vector<64x128xf32>
      %22 = arith.subf %17, %21 : vector<64x128xf32>
      %c0_13 = arith.constant 0 : index
      %c0_14 = arith.constant 0 : index
      %23 = vector.load %arg12[%c0_13, %c0_14] : memref<64x1xf32, #tpu.memory_space<vmem>>, vector<64x1xf32>
      %cst_15 = arith.constant dense<0.000000e+00> : vector<64xf32>
      %24 = vector.multi_reduction <add>, %17, %cst_15 [1] : vector<64x128xf32> to vector<64xf32>
      %25 = vector.shape_cast %24 : vector<64xf32> to vector<64x1xf32>
      %26 = arith.addf %23, %25 : vector<64x1xf32>
      %c0_16 = arith.constant 0 : index
      %c0_17 = arith.constant 0 : index
      %27 = vector.load %arg12[%c0_16, %c0_17] : memref<64x1xf32, #tpu.memory_space<vmem>>, vector<64x1xf32>
      tpu.vector_store %arg12[%c0_16, %c0_17], %26 {strides = array<i32>} : memref<64x1xf32, #tpu.memory_space<vmem>>, vector<64x1xf32>,
      %c0_18 = arith.constant 0 : index
      %c0_19 = arith.constant 0 : index
      %28 = vector.load %arg13[%c0_18, %c0_19] : memref<64x1xf32, #tpu.memory_space<vmem>>, vector<64x1xf32>
      %29 = arith.mulf %22, %22 : vector<64x128xf32>
      %cst_20 = arith.constant dense<0.000000e+00> : vector<64xf32>
      %30 = vector.multi_reduction <add>, %29, %cst_20 [1] : vector<64x128xf32> to vector<64xf32>
      %31 = vector.shape_cast %30 : vector<64xf32> to vector<64x1xf32>
      %32 = arith.addf %28, %31 : vector<64x1xf32>
      %c0_21 = arith.constant 0 : index
      %c0_22 = arith.constant 0 : index
      %33 = vector.load %arg13[%c0_21, %c0_22] : memref<64x1xf32, #tpu.memory_space<vmem>>, vector<64x1xf32>
      tpu.vector_store %arg13[%c0_21, %c0_22], %32 {strides = array<i32>} : memref<64x1xf32, #tpu.memory_space<vmem>>, vector<64x1xf32>,
      %34 = arith.index_cast %1 : i32 to index
      %c0_23 = arith.constant 0 : index
      %c0_24 = arith.constant 0 : index
      %35 = vector.load %arg11[%34, %c0_23, %c0_24] : memref<4x64x128xf32, #tpu.memory_space<vmem>>, vector<1x64x128xf32>
      %36 = vector.shape_cast %35 : vector<1x64x128xf32> to vector<64x128xf32>
      %37 = vector.shape_cast %17 : vector<64x128xf32> to vector<1x64x128xf32>
      tpu.vector_store %arg11[%34, %c0_23, %c0_24], %37 {strides = array<i32>} : memref<4x64x128xf32, #tpu.memory_space<vmem>>, vector<1x64x128xf32>,
    } else {
    }
    %c1_i32 = arith.constant 1 : i32
    %8 = arith.cmpi eq, %arg0, %c1_i32 : i32
    %9 = arith.extui %8 : i1 to i32
    %c0_i32_3 = arith.constant 0 : i32
    %10 = arith.cmpi ne, %9, %c0_i32_3 : i32
    scf.if %10 {
      %11 = arith.extui %4 : i1 to i32
      %c0_i32_4 = arith.constant 0 : i32
      %12 = arith.cmpi ne, %11, %c0_i32_4 : i32
      scf.if %12 {
        %c0_19 = arith.constant 0 : index
        %c0_20 = arith.constant 0 : index
        %39 = vector.load %arg12[%c0_19, %c0_20] : memref<64x1xf32, #tpu.memory_space<vmem>>, vector<64x1xf32>
        %cst_21 = arith.constant 0.001953125 : f32
        %40 = vector.broadcast %cst_21 : f32 to vector<64x1xf32>
        %41 = arith.mulf %39, %40 : vector<64x1xf32>
        %c0_22 = arith.constant 0 : index
        %c0_23 = arith.constant 0 : index
        %42 = vector.load %arg13[%c0_22, %c0_23] : memref<64x1xf32, #tpu.memory_space<vmem>>, vector<64x1xf32>
        %cst_24 = arith.constant 0.001953125 : f32
        %43 = vector.broadcast %cst_24 : f32 to vector<64x1xf32>
        %44 = arith.mulf %42, %43 : vector<64x1xf32>
        %c0_25 = arith.constant 0 : index
        %c0_26 = arith.constant 0 : index
        %45 = vector.load %arg14[%c0_25, %c0_26] : memref<64x1xf32, #tpu.memory_space<vmem>>, vector<64x1xf32>
        %46 = arith.subf %41, %45 : vector<64x1xf32>
        %47 = arith.mulf %46, %46 : vector<64x1xf32>
        %48 = arith.subf %44, %47 : vector<64x1xf32>
        %cst_27 = arith.constant 0.000000e+00 : f32
        %49 = vector.broadcast %cst_27 : f32 to vector<64x1xf32>
        %50 = arith.maximumf %48, %49 : vector<64x1xf32>
        %c0_28 = arith.constant 0 : index
        %c0_29 = arith.constant 0 : index
        %51 = vector.load %arg6[%c0_28, %c0_29] : memref<64x1xf32, #tpu.memory_space<vmem>>, vector<64x1xf32>
        %cst_30 = arith.constant 9.99999974E-6 : f32
        %52 = vector.broadcast %cst_30 : f32 to vector<64x1xf32>
        %53 = arith.addf %50, %52 : vector<64x1xf32>
        %54 = math.rsqrt %53 : vector<64x1xf32>
        %55 = arith.mulf %51, %54 : vector<64x1xf32>
        %c0_31 = arith.constant 0 : index
        %c0_32 = arith.constant 0 : index
        %56 = vector.load %arg15[%c0_31, %c0_32] : memref<64x1xf32, #tpu.memory_space<vmem>>, vector<64x1xf32>
        tpu.vector_store %arg15[%c0_31, %c0_32], %55 {strides = array<i32>} : memref<64x1xf32, #tpu.memory_space<vmem>>, vector<64x1xf32>,
        %c0_33 = arith.constant 0 : index
        %c0_34 = arith.constant 0 : index
        %57 = vector.load %arg7[%c0_33, %c0_34] : memref<64x1xf32, #tpu.memory_space<vmem>>, vector<64x1xf32>
        %58 = arith.mulf %55, %41 : vector<64x1xf32>
        %59 = arith.subf %57, %58 : vector<64x1xf32>
        %c0_35 = arith.constant 0 : index
        %c0_36 = arith.constant 0 : index
        %60 = vector.load %arg16[%c0_35, %c0_36] : memref<64x1xf32, #tpu.memory_space<vmem>>, vector<64x1xf32>
        tpu.vector_store %arg16[%c0_35, %c0_36], %59 {strides = array<i32>} : memref<64x1xf32, #tpu.memory_space<vmem>>, vector<64x1xf32>,
      } else {
      }
      %13 = arith.index_cast %1 : i32 to index
      %c0 = arith.constant 0 : index
      %c0_5 = arith.constant 0 : index
      %14 = vector.load %arg11[%13, %c0, %c0_5] : memref<4x64x128xf32, #tpu.memory_space<vmem>>, vector<1x64x128xf32>
      %15 = vector.shape_cast %14 : vector<1x64x128xf32> to vector<64x128xf32>
      %c0_6 = arith.constant 0 : index
      %c0_7 = arith.constant 0 : index
      %16 = vector.load %arg15[%c0_6, %c0_7] : memref<64x1xf32, #tpu.memory_space<vmem>>, vector<64x1xf32>
      %17 = vector.broadcast %16 : vector<64x1xf32> to vector<64x128xf32>
      %18 = arith.mulf %15, %17 : vector<64x128xf32>
      %c0_8 = arith.constant 0 : index
      %c0_9 = arith.constant 0 : index
      %19 = vector.load %arg16[%c0_8, %c0_9] : memref<64x1xf32, #tpu.memory_space<vmem>>, vector<64x1xf32>
      %20 = vector.broadcast %19 : vector<64x1xf32> to vector<64x128xf32>
      %21 = arith.addf %18, %20 : vector<64x128xf32>
      %cst = arith.constant 0.000000e+00 : f32
      %22 = vector.broadcast %cst : f32 to vector<64x128xf32>
      %23 = arith.maximumf %21, %22 : vector<64x128xf32>
      %c0_10 = arith.constant 0 : index
      %c0_11 = arith.constant 0 : index
      %24 = vector.load %arg8[%c0_10, %c0_11] : memref<64x1xf32, #tpu.memory_space<vmem>>, vector<64x1xf32>
      %25 = vector.broadcast %24 : vector<64x1xf32> to vector<64x128xf32>
      %26 = arith.mulf %23, %25 : vector<64x128xf32>
      %cst_12 = arith.constant dense<0.000000e+00> : vector<128xf32>
      %27 = vector.multi_reduction <add>, %26, %cst_12 [0] : vector<64x128xf32> to vector<128xf32>
      %28 = vector.shape_cast %27 : vector<128xf32> to vector<1x128xf32>
      %c0_13 = arith.constant 0 : index
      %c0_14 = arith.constant 0 : index
      %29 = vector.load %arg9[%c0_13, %c0_14] : memref<1x1xf32, #tpu.memory_space<vmem>>, vector<1x1xf32>
      %30 = vector.broadcast %29 : vector<1x1xf32> to vector<1x128xf32>
      %31 = arith.addf %28, %30 : vector<1x128xf32>
      %32 = arith.negf %31 : vector<1x128xf32>
      %33 = math.exp %32 : vector<1x128xf32>
      %cst_15 = arith.constant 1.000000e+00 : f32
      %34 = vector.broadcast %cst_15 : f32 to vector<1x128xf32>
      %35 = arith.addf %34, %33 : vector<1x128xf32>
      %36 = arith.divf %34, %35 : vector<1x128xf32>
      %37 = vector.shape_cast %36 : vector<1x128xf32> to vector<1x1x128xf32>
      %c0_16 = arith.constant 0 : index
      %c0_17 = arith.constant 0 : index
      %c0_18 = arith.constant 0 : index
      %38 = vector.load %arg10[%c0_16, %c0_17, %c0_18] : memref<1x1x128xf32, #tpu.memory_space<vmem>>, vector<1x1x128xf32>
      tpu.vector_store %arg10[%c0_16, %c0_17, %c0_18], %37 {strides = array<i32>} : memref<1x1x128xf32, #tpu.memory_space<vmem>>, vector<1x1x128xf32>,
    } else {
    }
    return
  }
  func.func @transform_0(%arg0: i32, %arg1: i32, %arg2: i32) -> (i32, i32, i32) {
    %c1_i32 = arith.constant 1 : i32
    %0 = arith.subi %c1_i32, %arg0 : i32
    %1 = arith.muli %arg1, %0 : i32
    %c1_i32_0 = arith.constant 1 : i32
    %2 = arith.subi %c1_i32_0, %arg0 : i32
    %3 = arith.muli %arg2, %2 : i32
    %c0_i32 = arith.constant 0 : i32
    %c0_i32_1 = arith.constant 0 : i32
    return %1, %c0_i32, %3 : i32, i32, i32
  }
  func.func @transform_1(%arg0: i32, %arg1: i32, %arg2: i32) -> (i32, i32) {
    %c0_i32 = arith.constant 0 : i32
    %c0_i32_0 = arith.constant 0 : i32
    %c0_i32_1 = arith.constant 0 : i32
    return %c0_i32, %c0_i32_0 : i32, i32
  }
  func.func @transform_2(%arg0: i32, %arg1: i32, %arg2: i32) -> (i32, i32) {
    %c0_i32 = arith.constant 0 : i32
    %c0_i32_0 = arith.constant 0 : i32
    %c0_i32_1 = arith.constant 0 : i32
    return %c0_i32, %c0_i32_0 : i32, i32
  }
  func.func @transform_3(%arg0: i32, %arg1: i32, %arg2: i32) -> (i32, i32) {
    %c0_i32 = arith.constant 0 : i32
    %c0_i32_0 = arith.constant 0 : i32
    %c0_i32_1 = arith.constant 0 : i32
    return %c0_i32, %c0_i32_0 : i32, i32
  }
  func.func @transform_4(%arg0: i32, %arg1: i32, %arg2: i32) -> (i32, i32) {
    %c0_i32 = arith.constant 0 : i32
    %c0_i32_0 = arith.constant 0 : i32
    %c0_i32_1 = arith.constant 0 : i32
    return %c0_i32, %c0_i32_0 : i32, i32
  }
  func.func @transform_5(%arg0: i32, %arg1: i32, %arg2: i32) -> (i32, i32) {
    %c0_i32 = arith.constant 0 : i32
    %c0_i32_0 = arith.constant 0 : i32
    %c0_i32_1 = arith.constant 0 : i32
    return %c0_i32, %c0_i32_0 : i32, i32
  }
  func.func @transform_6(%arg0: i32, %arg1: i32, %arg2: i32) -> (i32, i32) {
    %c0_i32 = arith.constant 0 : i32
    %c0_i32_0 = arith.constant 0 : i32
    %c0_i32_1 = arith.constant 0 : i32
    return %c0_i32, %c0_i32_0 : i32, i32
  }
  func.func @transform_7(%arg0: i32, %arg1: i32, %arg2: i32) -> (i32, i32, i32) {
    %0 = arith.muli %arg1, %arg0 : i32
    %1 = arith.muli %arg2, %arg0 : i32
    %c0_i32 = arith.constant 0 : i32
    %c0_i32_0 = arith.constant 0 : i32
    return %0, %c0_i32, %1 : i32, i32, i32
  }
}

</mosaic_0001>

<bundles_post_ra>
// kernel: tpu_custom_call.1
= control target key start
LH: loop header
LB: loop body
LE: loop exit
PB: predicated region body
PF: predicated region fallthrough
CT: control target
= control target key end

     0   :  { %s2282_s0 = inlined_call_operand.vmem [shape: f32[2,64,256], index: 0, kind: input, shape index: {}]   ;;  %s2283_s1 = inlined_call_operand.hbm [shape: f32[64,64], index: 1, kind: input, shape index: {}]   ;;  %s2284_s2 = inlined_call_operand.vmem [shape: f32[64,1], index: 2, kind: input, shape index: {}]   ;;  %s2285_s3 = inlined_call_operand.vmem [shape: f32[64,1], index: 3, kind: input, shape index: {}]   ;;  %s2286_s4 = inlined_call_operand.vmem [shape: f32[64,1], index: 4, kind: input, shape index: {}]   ;;  %s2287_s5 = inlined_call_operand.vmem [shape: f32[64,1], index: 5, kind: input, shape index: {}]   ;;  %s2288_s6 = inlined_call_operand.<no memory space> [shape: f32[1,1], index: 6, kind: input, shape index: {}]   ;;  %s2289_s7 = inlined_call_operand.hbm [shape: f32[2,1,256], index: 7, kind: output, shape index: {}]  }
   0x1   :  { %2311 = sst [smem:[#allocation24_spill]] %s2282_s0  ;;  %v12_v0 = vstv %s2288_s6 }
   0x2   :  { %2312 = sst [smem:[#allocation25_spill]] %s2283_s1  ;;  %13 = vst [vmem:[#allocation8] sm:$0x1] %v12_v0 }
   0x3   :  { %2313 = sst [smem:[#allocation26_spill]] %s2284_s2 }
   0x4   :  { %2314 = sst [smem:[#allocation27_spill]] %s2285_s3 }
   0x5   :  { %2315 = sst [smem:[#allocation28_spill]] %s2286_s4 }
   0x6   :  { %2316 = sst [smem:[#allocation29_spill]] %s2287_s5 }
   0x7   :  { %2317 = sst [smem:[#allocation30_spill]] %s2289_s7 }
   0x8   :  { %14 = vsyncpa [#allocation11], 0 }
   0x9   :  { %15 = vsyncpa [#allocation12], 0 }
   0xa   :  { %17 = vsyncpa [#allocation12 + $0x1], 0  ;;  %s1748_s26 = smov 0   ;;  %s1750_s27 = smov 0  }
   0xb   :  { %s1752_s28 = smov 0   ;;  %s1754_s29 = smov 0  }
   0xc   :  { %s1756_s30 = smov 0   ;;  %s1758_s8 = smov 0  }
   0xd   :  { %s1760_s9 = smov 0   ;;  %s1762_s10 = smov 0  }
   0xe   :  { %s1764_s6 = smov 0   ;;  %s1766_s11 = smov 0  }
   0xf   :  { %s1768_s12 = smov 0   ;;  %s1770_s13 = smov 0  }
  0x10 LB: > { %2318 = sst [smem:[#allocation16_spill]] %s1652_s26  ;;  %s2293_s14 = sadd.s32 4294967295, %s1696_s13   ;;  %s1696_s13 = sphi %s1770_s13, %s23_s13   ;;  %s1692_s12 = sphi %s1768_s12, %s2370_s12   ;;  %s1688_s11 = sphi %s1766_s11, %s2362_s11   ;;  %s1684_s6 = sphi %s1764_s6, %s2369_s6   ;;  %s1680_s10 = sphi %s1762_s10, %s2361_s10   ;;  %s1676_s9 = sphi %s1760_s9, %s2360_s9   ;;  %s1672_s8 = sphi %s1758_s8, %s2368_s8   ;;  %s1668_s30 = sphi %s1756_s30, %s2367_s30   ;;  %s1664_s29 = sphi %s1754_s29, %s2366_s29   ;;  %s1660_s28 = sphi %s1752_s28, %s2365_s28   ;;  %s1656_s27 = sphi %s1750_s27, %s2364_s27   ;;  %s1652_s26 = sphi %s1748_s26, %s2363_s26  }
  0x11   : > { %2319 = sst [smem:[#allocation17_spill]] %s1672_s8  ;;  %s35_s16 = sadd.s32 1, %s1684_s6 }
  0x12   : > { %2320 = sst [smem:[#allocation18_spill]] %s1680_s10  ;;  %s38_s17 = sadd.s32 1, %s1688_s11 }
  0x13   : > { %2321 = sst [smem:[#allocation19_spill]] %s1684_s6  ;;  %p36_p0 = scmp.ge.s32.totalorder %s35_s16, 2 }
  0x14   : > { %2322 = sst [smem:[#allocation20_spill]] %s1688_s11  ;;  %s42_s18 = sadd.s32 1, %s1692_s12 }
  0x15   : > { %2323 = sst [smem:[#allocation21_spill]] %s1692_s12  ;;  %s46_s19 = ssub.s32 1, %s1692_s12 }
  0x16   : > { %s2372_s16 = smov (%p36_p0, %s35_s16), 0  ;;  %s2374_s17 = smov (!%p36_p0, %s38_s17), %s1688_s11 }
  0x17   : > { %s1819_s21 = smul.u32 %s1688_s11, %s46_s19  ;;  %p64_p1 = scmp.ne.s32.totalorder %s1668_s30, %s1664_s29 }
  0x18   : > { %p40_p2 = scmp.ge.s32.totalorder %s2374_s17, 2  ;;  %s1824_s22 = smul.u32 %s1684_s6, %s46_s19 }
  0x19   : > { %p65_p3 = scmp.eq.s32.totalorder %s1696_s13, 0  ;;  %s206_s23 = smul.u32 %s1688_s11, %s1692_s12 }
  0x1a   : > { %s2376_s17 = smov (%p40_p2, %s2374_s17), 0  ;;  %s2378_s18 = smov (!%p40_p2, %s42_s18), %s1692_s12 }
  0x1b   : > { %2324 = sst [smem:[#allocation22_spill]] %s2376_s17  ;;  %p1832_p4 = por %p65_p3, %p64_p1 }
  0x1c   : > { %s207_s25 = smul.u32 %s1684_s6, %s1692_s12  ;;  %p44_p5 = scmp.ge.s32.totalorder %s2378_s18, 2 }
  0x1d   : > { %s2325_s24 = scalar_select %p1832_p4, 1, 0 }
  0x1e   : > { %s215_s19 = sadd.s32 1, %s1660_s28  ;;  %p225_p6 = scmp.ne.s32.totalorder %s1660_s28, %s1656_s27 }
  0x1f   : > { %p226_p7 = scmp.eq.s32.totalorder %s2293_s14, 7  ;;  %s2380_s18 = smov (%p44_p5, %s2378_s18), 0 }
  0x20   : > { %p231_p9 = scmp.ne.s32.totalorder %s1656_s27, %s1652_s26  ;;  %s49_s15 = ssub.s32 1, %s2380_s18 }
  0x21   : > { %p1845_p8 = por %p226_p7, %p225_p6  ;;  %s208_s12 = smul.u32 %s2380_s18, %s2376_s17 }
  0x22   : > { %s50_s11 = smul.u32 %s49_s15, %s2376_s17  ;;  %s2328_s6 = sadd.s32 4294967294, %s1696_s13  }
  0x23   : > { %s2326_s20 = scalar_select %p1845_p8, 1, 0 }
  0x24   : > { %p232_p10 = scmp.eq.s32.totalorder %s2328_s6, 7  ;;  %s51_s14 = smul.u32 %s49_s15, %s2372_s16 }
  0x25   : > { %2327 = sst [smem:[#allocation23_spill]] %s2326_s20  ;;  %s210_s7 = ssub.s32 %s206_s23, %s208_s12 }
  0x26   : > { %s52_s5 = ssub.s32 %s1819_s21, %s50_s11  ;;  %s209_s4 = smul.u32 %s2380_s18, %s2372_s16 }
  0x27   : > { %s53_s3 = ssub.s32 %s1824_s22, %s51_s14  ;;  %p1862_p11 = por %p232_p10, %p231_p9 }
  0x28   : > { %s54_s26 = sor.u32 %s53_s3, %s52_s5  ;;  %s211_s20 = ssub.s32 %s207_s25, %s209_s4 }
  0x29   : > { %s2329_s2 = scalar_select %p1862_p11, 1, 0 }
  0x2a   : > { %p55_p12 = scmp.eq.s32.totalorder %s54_s26, 0  ;;  %s212_s10 = sor.u32 %s211_s20, %s210_s7 }
  0x2b   : > { %p213_p13 = scmp.eq.s32.totalorder %s212_s10, 0  ;;  %p1298_p0 = scmp.ge.s32.totalorder %s1696_s13, 1 }
  0x2c   : > { %s2330_s17 = sadd.s32 1, %s1668_s30  ;;  %p239_p1 = scmp.lt.s32.totalorder %s1696_s13, 9 }
  0x2d   : > { %s1870_s8 = scalar_select %p55_p12, %s1668_s30, %s2330_s17  }
  0x2e   : > { %s1873_s6 = scalar_select %p213_p13, %s1660_s28, %s215_s19  }
  0x2f   : > { %s2331_s12 = sadd.s32 4294967295, %s1696_s13   ;;  %p1882_p3 = pnand %p1298_p0, %p239_p1 }
  0x30   : > { %p1878_p2 = scmp.eq.s32.totalorder %s2331_s12, 0  ;;  %s1698_s3 = smov [#allocation10]  }
  0x31   : > { %s2333_s14 = scalar_select %p1882_p3, 1, 0 }
  0x32   : > { %s2332_s11 = scalar_select %p1878_p2, 1, 0 }
  0x33   : > { %s251_s4 = sshll.u32 %s1698_s3, 4  ;;  %p1399_p5 = pneg %p1882_p3  ;;  %s252_s4 = int_to_ptr.vmem [resolvable:$true] %s251_s4 }
  0x34   : > { %s2335_s1 = sld [smem:[#allocation25_spill]] }
  0x35   : > { %p1890_p6 = pnand %p1878_p2, %p1399_p5 }
  0x37   : > { %p1540_p9 = pneg %p1890_p6 }
  0x3a   : > { %s1538_s10 = scalar_lea.hbm %s2335_s1, 1024 }
  0x3b   : > { %p1539_p7 = scmp.ne.s32.totalorder %s2335_s1, %s1538_s10  ;;  %p1545_p13 = scmp.lt.u32.totalorder %s1538_s10, %s2335_s1 }
  0x3d   : > { %p1541_p10 = pnand %p1540_p9, %p1539_p7 }
  0x3f   : > { %p1542_p12 = pneg %p1541_p10 }
  0x41   : > { %p1547_p0 = pnand %p1545_p13, %p1542_p12 }
  0x43   : > { %1550 = shalt.err (!%p1547_p0)
}
  0x44   : > { %s1551_s25 = scalar_lea.vmem %s252_s4, 1024  ;;  %p1559_p8 = scmp.lt.s32.totalorder %s252_s4, %s252_s4 }
  0x45   : > { %p1552_p1 = scmp.ne.s32.totalorder %s252_s4, %s1551_s25  ;;  %p1560_p2 = scmp.lt.s32.totalorder %s1551_s25, %s1551_s25 }
  0x47   : > { %p1554_p5 = pnand %p1552_p1, %p1540_p9  ;;  %p1561_p3 = por %p1560_p2, %p1559_p8 }
  0x49   : > { %p1555_p11 = pneg %p1554_p5 }
  0x4b   : > { %p1562_p4 = pnand %p1561_p3, %p1555_p11 }
  0x4d   : > { %1565 = shalt.err (!%p1562_p4)
}
  0x4e   : > { %s1699_s19 = smov 128   ;;  %s1700_s12 = smov 8  }
  0x4f   : > { %1402 = dma.hbm_to_vmem [thread:$0]  (!%p1890_p6), %s2335_s1, 1024, %s252_s4, [#allocation11], %s1699_s19, %s1699_s19, %s1700_s12  }
  0x50   : > { %p1300_p7 = scmp.ge.s32.totalorder %s1696_s13, 8 }
  0x51   : > { %p2336_p10 = scmp.ne.s32.totalorder (!%p1300_p7), %s2325_s24, 0 }
  0x52   : > { %276 = sbr.rel (%p1300_p7) target bundleno = 103 (0x67), region = 40 }
  0x59   : > { %279 = sbr.rel (!%p2336_p10) target bundleno = 103 (0x67), region = 44  ;;  %s281_s26 = sand.u32 (%p2336_p10), 1, %s1668_s30  }
  0x5a   : > { %s1302_s10 = sshll.u32 (%p2336_p10), %s1819_s21, 4  ;;  %s1301_s15 = sshll.u32 (%p2336_p10), %s281_s26, 6 }
  0x5b   : > { %s288_s17 = sadd.s32 (%p2336_p10), %s1302_s10, %s1824_s22  ;;  %s2337_s0 = sld [smem:[#allocation24_spill]] (%p2336_p10) }
  0x5c   : > { %s1303_s20 = sshll.u32 (%p2336_p10), %s288_s17, 3  ;;  %s283_s4 = scalar_lea.vmem (%p2336_p10), [#allocation9], %s1301_s15 }
  0x61   : > { %s290_s25 = scalar_lea.vmem %s2337_s0, %s1303_s20 }
  0x62   : > { %v332_v1 = vld [vmem:[%s290_s25] sm:$0xff]  ;;  %v334_v2 = vld [vmem:[%s290_s25 + $0x10] sm:$0xff] }
  0x63   : > { %v336_v3 = vld [vmem:[%s290_s25 + $0x20] sm:$0xff]  ;;  %333 = vst [vmem:[%s283_s4] sm:$0xff] %v332_v1  ;;  %335 = vst [vmem:[%s283_s4 + $0x8] sm:$0xff] %v334_v2  ;;  %v338_v4 = vld [vmem:[%s290_s25 + $0x30] sm:$0xff] }
  0x64   : > { %337 = vst [vmem:[%s283_s4 + $0x10] sm:$0xff] %v336_v3  ;;  %v340_v5 = vld [vmem:[%s290_s25 + $0x40] sm:$0xff]  ;;  %v342_v6 = vld [vmem:[%s290_s25 + $0x50] sm:$0xff]  ;;  %339 = vst [vmem:[%s283_s4 + $0x18] sm:$0xff] %v338_v4 }
  0x65   : > { %341 = vst [vmem:[%s283_s4 + $0x20] sm:$0xff] %v340_v5  ;;  %343 = vst [vmem:[%s283_s4 + $0x28] sm:$0xff] %v342_v6  ;;  %v344_v7 = vld [vmem:[%s290_s25 + $0x60] sm:$0xff]  ;;  %v346_v8 = vld [vmem:[%s290_s25 + $0x70] sm:$0xff] }
  0x66   : > { %345 = vst [vmem:[%s283_s4 + $0x30] sm:$0xff] %v344_v7  ;;  %347 = vst [vmem:[%s283_s4 + $0x38] sm:$0xff] %v346_v8 }
  0x67 PF: > { %p2338_p4 = scmp.ne.s32.totalorder %s2333_s14, 0 }
  0x68   : > { %s359_s21 = sand.u32 (!%p2338_p4), 1, %s1664_s29   ;;  %p2339_p8 = scmp.ne.s32.totalorder (!%p2338_p4), %s2332_s11, 0 }
  0x69   : > { %356 = sbr.rel (%p2338_p4) target bundleno = 1120 (0x460), region = 82  ;;  %s1305_s22 = sshll.u32 (!%p2338_p4), %s359_s21, 6 }
  0x6a   : > { %s1922_s24 = scalar_lea.vmem (!%p2338_p4), [#allocation9], %s1305_s22 }
  0x70   : > { %1643 = dma.done.wait (%p2339_p8), [#allocation11], 1024  }
  0x71   : > { %1645 = vsyncadd (%p2339_p8), [#allocation11], 4294966272  ;;  %s2340_s19 = sld [smem:[#allocation17_spill]]  ;;  %s2309_s12 = sand.u32 1, %s1656_s27  }
  0x72   : > { %s1307_s14 = sshll.u32 %s1676_s9, 1  ;;  %p400_p11 = scmp.eq.s32.totalorder %s1676_s9, 0 }
  0x73   : > { %s1941_s7 = scalar_lea.vmem [#allocation13], %s2309_s12  ;;  %s2342_s11 = sld [smem:[#allocation18_spill]] }
  0x77   : > { %s1931_s3 = sadd.s32 %s2340_s19, %s1307_s14  ;;  %p401_p2 = scmp.eq.s32.totalorder %s2340_s19, 0 }
  0x79   : > { %p1935_p3 = pnand %p401_p2, %p400_p11  ;;  %p1308_p6 = scmp.ne.s32.totalorder %s2342_s11, 0 }
  0x7a   : > { %v416_v9 = vld [vmem:[%s1922_s24] sm:$0xff] (!%p1308_p6)  ;;  %v417_v10 = vld [vmem:[%s1922_s24 + $0x8] sm:$0xff] (!%p1308_p6)  ;;  %v418_v11 = vld [vmem:[%s1922_s24 + $0x10] sm:$0xff] (!%p1308_p6)  ;;  %v1701_v14 = vmov (!%p1308_p6), 0   ;;  %vm472_vm0 = vcmask (!%p1308_p6), 523264   ;;  %s2343_s15 = sld [smem:[#allocation26_spill]] (!%p1308_p6) }
  0x7b   : > { %407 = sbr.rel (%p1308_p6) target bundleno = 811 (0x32b), region = 94  ;;  %v1369_v12 = vpack.c.bf16 (!%p1308_p6), %v417_v10, %v416_v9  ;;  %v419_v13 = vld [vmem:[%s1922_s24 + $0x18] sm:$0xff] (!%p1308_p6)  ;;  %1513 = vset.pattern.permute.xlu1 (!%p1308_p6), %v1701_v14  ;;  %1512 = vset.pattern.permute.xlu0 (!%p1308_p6), %v1701_v14  ;;  %v420_v16 = vld [vmem:[%s1922_s24 + $0x20] sm:$0xff] (!%p1308_p6)  ;;  %v421_v17 = vld [vmem:[%s1922_s24 + $0x28] sm:$0xff] (!%p1308_p6) }
  0x7c   : > { %v1373_v15 = vpack.c.bf16 (!%p1308_p6), %v419_v13, %v418_v11  ;;  %v408_v18 = vld [vmem:[#allocation10] sm:$0xff] (!%p1308_p6)  ;;  %v1377_v20 = vpack.c.bf16 (!%p1308_p6), %v421_v17, %v420_v16  ;;  %v422_v23 = vld [vmem:[%s1922_s24 + $0x30] sm:$0xff] (!%p1308_p6)  ;;  %v423_v24 = vld [vmem:[%s1922_s24 + $0x38] sm:$0xff] (!%p1308_p6) }
  0x7d   : > { %1370 = vmatprep.subr.bf16.mxu0 (!%p1308_p6), %v1369_v12  ;;  %1385 = vmatprep.subr.bf16.mxu1 (!%p1308_p6), %v1369_v12  ;;  %v412_v19 = vld [vmem:[#allocation10 + $0x20] sm:$0xff] (!%p1308_p6)  ;;  %v1381_v27 = vpack.c.bf16 (!%p1308_p6), %v423_v24, %v422_v23  ;;  %v409_v30 = vld [vmem:[#allocation10 + $0x8] sm:$0xff] (!%p1308_p6)  ;;  %v410_v32 = vld [vmem:[#allocation10 + $0x10] sm:$0xff] (!%p1308_p6) }
  0x7e   : > { %1372 = vmatpush3.bf16.msra.mxu0 (!%p1308_p6), %v1369_v12  ;;  %1389 = vmatpush3.bf16.msra.mxu1 (!%p1308_p6), %v1369_v12  ;;  %v413_v31 = vld [vmem:[#allocation10 + $0x28] sm:$0xff] (!%p1308_p6)  ;;  %v414_v33 = vld [vmem:[#allocation10 + $0x30] sm:$0xff] (!%p1308_p6)  ;;  %v411_v36 = vld [vmem:[#allocation10 + $0x18] sm:$0xff] (!%p1308_p6) }
  0x7f   : > { %1374 = vmatprep.subr.bf16.mxu0 (!%p1308_p6), %v1373_v15  ;;  %1386 = vmatprep.subr.bf16.mxu1 (!%p1308_p6), %v1373_v15  ;;  %v415_v37 = vld [vmem:[#allocation10 + $0x38] sm:$0xff] (!%p1308_p6) }
  0x80   : > { %v426_v21 = vld [vmem:[%s2343_s15 + $0x10] sm:$0xff] (!%p1308_p6)  ;;  %v424_v22 = vld [vmem:[%s2343_s15] sm:$0xff] (!%p1308_p6)  ;;  %1357 = vmatprep.mubr.msk.f32.mxu0 (!%p1308_p6), %vm472_vm0, %v408_v18  ;;  %1363 = vmatprep.mubr.msk.f32.mxu1 (!%p1308_p6), %vm472_vm0, %v412_v19  ;;  %v427_v25 = vld [vmem:[%s2343_s15 + $0x18] sm:$0xff] (!%p1308_p6) }
  0x81   : > { %444 = vperm.xlu1 (!%p1308_p6), %1513, %v426_v21   ;;  %434 = vperm.xlu0 (!%p1308_p6), %1512, %v424_v22   ;;  %v425_v26 = vld [vmem:[%s2343_s15 + $0x8] sm:$0xff] (!%p1308_p6)  ;;  %v428_v29 = vld [vmem:[%s2343_s15 + $0x20] sm:$0xff] (!%p1308_p6)  ;;  %v431_v34 = vld [vmem:[%s2343_s15 + $0x38] sm:$0xff] (!%p1308_p6) }
  0x82   : > { %1376 = vmatpush3.bf16.msra.mxu0 %v1373_v15  ;;  %1390 = vmatpush3.bf16.msra.mxu1 %v1373_v15  ;;  %v429_v28 = vld [vmem:[%s2343_s15 + $0x28] sm:$0xff]  ;;  %v430_v35 = vld [vmem:[%s2343_s15 + $0x30] sm:$0xff]  ;;  %vm629_vm1 = vcmask (!%p1935_p3), 7168   ;;  %v1702_v62 = vmov (!%p1935_p3), 0.0  }
  0x83   : > { %1378 = vmatprep.subr.bf16.mxu0 %v1377_v20  ;;  %1387 = vmatprep.subr.bf16.mxu1 %v1377_v20  ;;  %638 = vst.msk [vmem:[#allocation3] sm:$0xff] (!%p1935_p3), %vm629_vm1, %v1702_v62  ;;  %639 = vst.msk [vmem:[#allocation3 + $0x8] sm:$0xff] (!%p1935_p3), %vm629_vm1, %v1702_v62 }
  0x84   : > { %640 = vst.msk [vmem:[#allocation3 + $0x10] sm:$0xff] (!%p1935_p3), %vm629_vm1, %v1702_v62  ;;  %641 = vst.msk [vmem:[#allocation3 + $0x18] sm:$0xff] (!%p1935_p3), %vm629_vm1, %v1702_v62 }
  0x85   : > { %449 = vperm.xlu1 %1513, %v427_v25   ;;  %439 = vperm.xlu0 %1512, %v425_v26   ;;  %642 = vst.msk [vmem:[#allocation3 + $0x20] sm:$0xff] (!%p1935_p3), %vm629_vm1, %v1702_v62  ;;  %643 = vst.msk [vmem:[#allocation3 + $0x28] sm:$0xff] (!%p1935_p3), %vm629_vm1, %v1702_v62 }
  0x86   : > { %1380 = vmatpush3.bf16.msra.mxu0 %v1377_v20  ;;  %1391 = vmatpush3.bf16.msra.mxu1 %v1377_v20  ;;  %644 = vst.msk [vmem:[#allocation3 + $0x30] sm:$0xff] (!%p1935_p3), %vm629_vm1, %v1702_v62  ;;  %645 = vst.msk [vmem:[#allocation3 + $0x38] sm:$0xff] (!%p1935_p3), %vm629_vm1, %v1702_v62 }
  0x87   : > { %1382 = vmatprep.subr.bf16.mxu0 %v1381_v27  ;;  %1388 = vmatprep.subr.bf16.mxu1 %v1381_v27  ;;  %646 = vst.msk [vmem:[#allocation4] sm:$0xff] (!%p1935_p3), %vm629_vm1, %v1702_v62  ;;  %647 = vst.msk [vmem:[#allocation4 + $0x8] sm:$0xff] (!%p1935_p3), %vm629_vm1, %v1702_v62 }
  0x88   : > { %648 = vst.msk [vmem:[#allocation4 + $0x10] sm:$0xff] (!%p1935_p3), %vm629_vm1, %v1702_v62  ;;  %649 = vst.msk [vmem:[#allocation4 + $0x18] sm:$0xff] (!%p1935_p3), %vm629_vm1, %v1702_v62 }
  0x89   : > { %459 = vperm.xlu1 %1513, %v429_v28   ;;  %454 = vperm.xlu0 %1512, %v428_v29   ;;  %650 = vst.msk [vmem:[#allocation4 + $0x20] sm:$0xff] (!%p1935_p3), %vm629_vm1, %v1702_v62  ;;  %651 = vst.msk [vmem:[#allocation4 + $0x28] sm:$0xff] (!%p1935_p3), %vm629_vm1, %v1702_v62 }
  0x8a   : > { %1384 = vmatpush3.bf16.msra.mxu0 %v1381_v27  ;;  %1392 = vmatpush3.bf16.msra.mxu1 %v1381_v27  ;;  %652 = vst.msk [vmem:[#allocation4 + $0x30] sm:$0xff] (!%p1935_p3), %vm629_vm1, %v1702_v62  ;;  %653 = vst.msk [vmem:[#allocation4 + $0x38] sm:$0xff] (!%p1935_p3), %vm629_vm1, %v1702_v62 }
  0x8d   : > { %1358 = vmatmul.mubr.msk.f32.vlgmr.msra.gmra.mrb[0].mxu0 %vm472_vm0, %v409_v30  ;;  %1364 = vmatmul.mubr.msk.f32.vlgmr.msra.gmra.mrb[0].mxu1 %vm472_vm0, %v413_v31 }
  0x8e   : > { %1360 = vmatprep.mubr.msk.f32.mxu0 %vm472_vm0, %v410_v32  ;;  %1366 = vmatprep.mubr.msk.f32.mxu1 %vm472_vm0, %v414_v33 }
  0x8f   : > { %469 = vperm.xlu1 %1513, %v431_v34   ;;  %464 = vperm.xlu0 %1512, %v430_v35  }
  0x91   : > { %1361 = vmatmul.mubr.msk.f32.gmra.mrb[2].mxu0 %vm472_vm0, %v411_v36  ;;  %1367 = vmatmul.mubr.msk.f32.gmra.mrb[2].mxu1 %vm472_vm0, %v415_v37 }
 0x100   : > { %v445_v38 = vpop.permute.xlu1 %444  ;;  %v435_v39 = vpop.permute.xlu0 %434 }
 0x104   : > { %v450_v40 = vpop.permute.xlu1 %449  ;;  %v440_v41 = vpop.permute.xlu0 %439 }
 0x108   : > { %v460_v42 = vpop.permute.xlu1 %459  ;;  %v455_v43 = vpop.permute.xlu0 %454 }
 0x10e   : > { %v470_v52 = vpop.permute.xlu1 %469  ;;  %v465_v53 = vpop.permute.xlu0 %464 }
 0x160   : > { %v1359_v44 = vpop.f32.mrb[0].mxu0  ;;  %v1365_v45 = vpop.f32.mrb[0].mxu1  ;;  %603 = sbr.rel (%p1935_p3) target bundleno = 517 (0x205), region = 98 }
 0x161   : > { %v1986_v46 = vadd.f32 %v1359_v44, %v440_v41  ;;  %v1988_v47 = vadd.f32 %v1365_v45, %v460_v42  ;;  %v563_v48 = vpop.f32.mrb[1].mxu0  ;;  %v583_v49 = vpop.f32.mrb[1].mxu1 }
 0x162   : > { %v1990_v50 = vadd.f32 %v563_v48, %v435_v39  ;;  %v1992_v51 = vadd.f32 %v583_v49, %v455_v43 }
 0x164   : > { %v1362_v54 = vpop.f32.mrb[2].mxu0  ;;  %v1368_v55 = vpop.f32.mrb[2].mxu1  ;;  %604 = vadd.xlane.f32.xlu0 (!%p1935_p3), %v1990_v50 }
 0x165   : > { %v1994_v56 = vadd.f32 %v1362_v54, %v450_v40  ;;  %v1996_v57 = vadd.f32 %v1368_v55, %v470_v52  ;;  %v573_v58 = vpop.f32.mrb[3].mxu0  ;;  %v593_v59 = vpop.f32.mrb[3].mxu1 }
 0x166   : > { %v1998_v60 = vadd.f32 %v573_v58, %v445_v38  ;;  %v2000_v61 = vadd.f32 %v593_v59, %v465_v53 }
 0x168   : > { %608 = vadd.xlane.f32.xlu1 %v1998_v60  ;;  %606 = vadd.xlane.f32.xlu0 %v1986_v46 }
 0x16c   : > { %610 = vadd.xlane.f32.xlu1 %v1994_v56  ;;  %612 = vadd.xlane.f32.xlu0 %v1992_v51 }
 0x170   : > { %614 = vadd.xlane.f32.xlu1 %v1988_v47  ;;  %616 = vadd.xlane.f32.xlu0 %v2000_v61 }
 0x174   : > { %618 = vadd.xlane.f32.xlu1 %v1996_v57 }
 0x1f1   : > { %v605_v0 = vpop.xlane.xlu0 %604 }
 0x1f2   : > { %v621_v2 = vmul.f32 0.0078125, %v605_v0 }
 0x1f4   : > { %630 = vst.msk [vmem:[#allocation5] sm:$0xff] %vm629_vm1, %v621_v2 }
 0x1f5   : > { %v609_v63 = vpop.xlane.xlu1 %608  ;;  %v607_v4 = vpop.xlane.xlu0 %606 }
 0x1f6   : > { %v623_v1 = vmul.f32 0.0078125, %v609_v63  ;;  %v622_v6 = vmul.f32 0.0078125, %v607_v4 }
 0x1f8   : > { %632 = vst.msk [vmem:[#allocation5 + $0x10] sm:$0xff] %vm629_vm1, %v623_v1  ;;  %631 = vst.msk [vmem:[#allocation5 + $0x8] sm:$0xff] %vm629_vm1, %v622_v6 }
 0x1f9   : > { %v611_v3 = vpop.xlane.xlu1 %610  ;;  %v613_v8 = vpop.xlane.xlu0 %612 }
 0x1fa   : > { %v624_v5 = vmul.f32 0.0078125, %v611_v3  ;;  %v625_v10 = vmul.f32 0.0078125, %v613_v8 }
 0x1fc   : > { %633 = vst.msk [vmem:[#allocation5 + $0x18] sm:$0xff] %vm629_vm1, %v624_v5  ;;  %634 = vst.msk [vmem:[#allocation5 + $0x20] sm:$0xff] %vm629_vm1, %v625_v10 }
 0x1fd   : > { %v615_v7 = vpop.xlane.xlu1 %614  ;;  %v617_v12 = vpop.xlane.xlu0 %616 }
 0x1fe   : > { %v626_v9 = vmul.f32 0.0078125, %v615_v7  ;;  %v627_v15 = vmul.f32 0.0078125, %v617_v12 }
 0x200   : > { %635 = vst.msk [vmem:[#allocation5 + $0x28] sm:$0xff] %vm629_vm1, %v626_v9  ;;  %636 = vst.msk [vmem:[#allocation5 + $0x30] sm:$0xff] %vm629_vm1, %v627_v15 }
 0x201   : > { %v619_v11 = vpop.xlane.xlu1 %618 }
 0x202   : > { %v628_v13 = vmul.f32 0.0078125, %v619_v11 }
 0x204   : > { %637 = vst.msk [vmem:[#allocation5 + $0x38] sm:$0xff] %vm629_vm1, %v628_v13 }
 0x205 PF: > { %1515 = vset.pattern.permute.xlu1 %v1701_v14  ;;  %1514 = vset.pattern.permute.xlu0 %v1701_v14  ;;  %v656_v16 = vld [vmem:[#allocation5 + $0x10] sm:$0xff]  ;;  %v654_v17 = vld [vmem:[#allocation5] sm:$0xff]  ;;  %v657_v18 = vld [vmem:[#allocation5 + $0x18] sm:$0xff]  ;;  %s1317_s17 = sshll.u32 %s1931_s3, 6  ;;  %vm742_vm2 = vcmask 7168  }
 0x206   : > { %674 = vperm.xlu1 %1515, %v656_v16   ;;  %664 = vperm.xlu0 %1514, %v654_v17   ;;  %v655_v19 = vld [vmem:[#allocation5 + $0x8] sm:$0xff]  ;;  %v658_v21 = vld [vmem:[#allocation5 + $0x20] sm:$0xff]  ;;  %s800_s20 = scalar_lea.vmem [#allocation2], %s1317_s17  ;;  %v712_v54 = vld [vmem:[#allocation3 + $0x10] sm:$0xff] }
 0x207   : > { %v659_v20 = vld [vmem:[#allocation5 + $0x28] sm:$0xff]  ;;  %v660_v23 = vld [vmem:[#allocation5 + $0x30] sm:$0xff]  ;;  %801 = vst [vmem:[%s800_s20] sm:$0xff] %v1990_v50  ;;  %802 = vst [vmem:[%s800_s20 + $0x8] sm:$0xff] %v1986_v46 }
 0x208   : > { %803 = vst [vmem:[%s800_s20 + $0x10] sm:$0xff] %v1998_v60  ;;  %804 = vst [vmem:[%s800_s20 + $0x18] sm:$0xff] %v1994_v56  ;;  %v710_v49 = vld [vmem:[#allocation3] sm:$0xff]  ;;  %v713_v59 = vld [vmem:[#allocation3 + $0x18] sm:$0xff] }
 0x209   : > { %805 = vst [vmem:[%s800_s20 + $0x20] sm:$0xff] %v1992_v51  ;;  %806 = vst [vmem:[%s800_s20 + $0x28] sm:$0xff] %v1988_v47  ;;  %v715_v62 = vld [vmem:[#allocation3 + $0x28] sm:$0xff]  ;;  %v716_v63 = vld [vmem:[#allocation3 + $0x30] sm:$0xff] }
 0x20a   : > { %679 = vperm.xlu1 %1515, %v657_v18   ;;  %669 = vperm.xlu0 %1514, %v655_v19   ;;  %807 = vst [vmem:[%s800_s20 + $0x30] sm:$0xff] %v2000_v61  ;;  %808 = vst [vmem:[%s800_s20 + $0x38] sm:$0xff] %v1996_v57  ;;  %v717_v4 = vld [vmem:[#allocation3 + $0x38] sm:$0xff]  ;;  %v751_v7 = vld [vmem:[#allocation4] sm:$0xff] }
 0x20b   : > { %v661_v22 = vld [vmem:[#allocation5 + $0x38] sm:$0xff]  ;;  %v753_v10 = vld [vmem:[#allocation4 + $0x10] sm:$0xff]  ;;  %v752_v11 = vld [vmem:[#allocation4 + $0x8] sm:$0xff] }
 0x20c   : > { %v755_v17 = vld [vmem:[#allocation4 + $0x20] sm:$0xff]  ;;  %v754_v18 = vld [vmem:[#allocation4 + $0x18] sm:$0xff] }
 0x20e   : > { %689 = vperm.xlu1 %1515, %v659_v20   ;;  %684 = vperm.xlu0 %1514, %v658_v21  }
 0x212   : > { %699 = vperm.xlu1 %1515, %v661_v22   ;;  %694 = vperm.xlu0 %1514, %v660_v23   ;;  %v757_v23 = vld [vmem:[#allocation4 + $0x30] sm:$0xff] }
 0x231   : > { %718 = vadd.xlane.f32.xlu0 %v1990_v50 }
 0x235   : > { %722 = vadd.xlane.f32.xlu0 %v1998_v60 }
 0x236   : > { %720 = vadd.xlane.f32.xlu1 %v1986_v46 }
 0x239   : > { %724 = vadd.xlane.f32.xlu0 %v1994_v56 }
 0x23a   : > { %726 = vadd.xlane.f32.xlu1 %v1992_v51 }
 0x23d   : > { %728 = vadd.xlane.f32.xlu0 %v1988_v47 }
 0x23e   : > { %730 = vadd.xlane.f32.xlu1 %v2000_v61 }
 0x241   : > { %732 = vadd.xlane.f32.xlu0 %v1996_v57 }
 0x285   : > { %v675_v14 = vpop.permute.xlu1 %674  ;;  %v665_v24 = vpop.permute.xlu0 %664 }
 0x286   : > { %v704_v25 = vsub.f32 %v1998_v60, %v675_v14  ;;  %v702_v26 = vsub.f32 %v1990_v50, %v665_v24  ;;  %v756_v14 = vld [vmem:[#allocation4 + $0x28] sm:$0xff] }
 0x288   : > { %v759_v27 = vmul.f32 %v702_v26, %v702_v26  ;;  %v761_v30 = vmul.f32 %v704_v25, %v704_v25 }
 0x289   : > { %v680_v28 = vpop.permute.xlu1 %679  ;;  %v670_v29 = vpop.permute.xlu0 %669 }
 0x28a   : > { %v703_v31 = vsub.f32 %v1986_v46, %v670_v29  ;;  %767 = vadd.xlane.f32.xlu1 %v759_v27  ;;  %v705_v32 = vsub.f32 %v1994_v56, %v680_v28  ;;  %v711_v46 = vld [vmem:[#allocation3 + $0x8] sm:$0xff]  ;;  %v758_v28 = vld [vmem:[#allocation4 + $0x38] sm:$0xff] }
 0x28c   : > { %v760_v33 = vmul.f32 %v703_v31, %v703_v31  ;;  %v762_v37 = vmul.f32 %v705_v32, %v705_v32 }
 0x28d   : > { %v690_v34 = vpop.permute.xlu1 %689  ;;  %v685_v35 = vpop.permute.xlu0 %684 }
 0x28e   : > { %v706_v36 = vsub.f32 %v1992_v51, %v685_v35  ;;  %771 = vadd.xlane.f32.xlu1 %v761_v30  ;;  %769 = vadd.xlane.f32.xlu0 %v760_v33  ;;  %v707_v38 = vsub.f32 %v1988_v47, %v690_v34  ;;  %v714_v47 = vld [vmem:[#allocation3 + $0x20] sm:$0xff] }
 0x290   : > { %v763_v39 = vmul.f32 %v706_v36, %v706_v36  ;;  %v764_v43 = vmul.f32 %v707_v38, %v707_v38 }
 0x291   : > { %v700_v40 = vpop.permute.xlu1 %699  ;;  %v695_v41 = vpop.permute.xlu0 %694 }
 0x292   : > { %v708_v42 = vsub.f32 %v2000_v61, %v695_v41  ;;  %773 = vadd.xlane.f32.xlu0 %v762_v37  ;;  %775 = vadd.xlane.f32.xlu1 %v763_v39  ;;  %v709_v44 = vsub.f32 %v1996_v57, %v700_v40 }
 0x294   : > { %v765_v45 = vmul.f32 %v708_v42, %v708_v42  ;;  %v766_v48 = vmul.f32 %v709_v44, %v709_v44 }
 0x296   : > { %777 = vadd.xlane.f32.xlu0 %v764_v43  ;;  %779 = vadd.xlane.f32.xlu1 %v765_v45 }
 0x29a   : > { %781 = vadd.xlane.f32.xlu0 %v766_v48 }
 0x2be   : > { %v719_v52 = vpop.xlane.xlu0 %718 }
 0x2bf   : > { %v734_v53 = vadd.f32 %v719_v52, %v710_v49 }
 0x2c1   : > { %743 = vst.msk [vmem:[#allocation3] sm:$0xff] %vm742_vm2, %v734_v53 }
 0x2c2   : > { %v723_v50 = vpop.xlane.xlu0 %722 }
 0x2c3   : > { %v721_v55 = vpop.xlane.xlu1 %720  ;;  %v736_v58 = vadd.f32 %v723_v50, %v712_v54 }
 0x2c4   : > { %v735_v56 = vadd.f32 %v721_v55, %v711_v46 }
 0x2c5   : > { %745 = vst.msk [vmem:[#allocation3 + $0x10] sm:$0xff] %vm742_vm2, %v736_v58 }
 0x2c6   : > { %744 = vst.msk [vmem:[#allocation3 + $0x8] sm:$0xff] %vm742_vm2, %v735_v56  ;;  %v725_v51 = vpop.xlane.xlu0 %724 }
 0x2c7   : > { %v727_v57 = vpop.xlane.xlu1 %726  ;;  %v737_v60 = vadd.f32 %v725_v51, %v713_v59 }
 0x2c8   : > { %v738_v61 = vadd.f32 %v727_v57, %v714_v47 }
 0x2c9   : > { %746 = vst.msk [vmem:[#allocation3 + $0x18] sm:$0xff] %vm742_vm2, %v737_v60 }
 0x2ca   : > { %747 = vst.msk [vmem:[#allocation3 + $0x20] sm:$0xff] %vm742_vm2, %v738_v61  ;;  %v729_v0 = vpop.xlane.xlu0 %728 }
 0x2cb   : > { %v731_v1 = vpop.xlane.xlu1 %730  ;;  %v739_v2 = vadd.f32 %v729_v0, %v715_v62 }
 0x2cc   : > { %v740_v3 = vadd.f32 %v731_v1, %v716_v63 }
 0x2cd   : > { %748 = vst.msk [vmem:[#allocation3 + $0x28] sm:$0xff] %vm742_vm2, %v739_v2 }
 0x2ce   : > { %749 = vst.msk [vmem:[#allocation3 + $0x30] sm:$0xff] %vm742_vm2, %v740_v3  ;;  %v733_v5 = vpop.xlane.xlu0 %732 }
 0x2cf   : > { %v741_v6 = vadd.f32 %v733_v5, %v717_v4 }
 0x2d1   : > { %750 = vst.msk [vmem:[#allocation3 + $0x38] sm:$0xff] %vm742_vm2, %v741_v6 }
 0x317   : > { %v768_v8 = vpop.xlane.xlu1 %767 }
 0x318   : > { %v783_v9 = vadd.f32 %v768_v8, %v751_v7 }
 0x31a   : > { %791 = vst.msk [vmem:[#allocation4] sm:$0xff] %vm742_vm2, %v783_v9 }
 0x31b   : > { %v772_v12 = vpop.xlane.xlu1 %771  ;;  %v770_v13 = vpop.xlane.xlu0 %769 }
 0x31c   : > { %v785_v15 = vadd.f32 %v772_v12, %v753_v10  ;;  %v784_v16 = vadd.f32 %v770_v13, %v752_v11 }
 0x31e   : > { %793 = vst.msk [vmem:[#allocation4 + $0x10] sm:$0xff] %vm742_vm2, %v785_v15  ;;  %792 = vst.msk [vmem:[#allocation4 + $0x8] sm:$0xff] %vm742_vm2, %v784_v16 }
 0x31f   : > { %v776_v19 = vpop.xlane.xlu1 %775  ;;  %v774_v20 = vpop.xlane.xlu0 %773 }
 0x320   : > { %v787_v21 = vadd.f32 %v776_v19, %v755_v17  ;;  %v786_v22 = vadd.f32 %v774_v20, %v754_v18 }
 0x322   : > { %795 = vst.msk [vmem:[#allocation4 + $0x20] sm:$0xff] %vm742_vm2, %v787_v21  ;;  %794 = vst.msk [vmem:[#allocation4 + $0x18] sm:$0xff] %vm742_vm2, %v786_v22 }
 0x323   : > { %v780_v24 = vpop.xlane.xlu1 %779  ;;  %v778_v25 = vpop.xlane.xlu0 %777 }
 0x324   : > { %v789_v26 = vadd.f32 %v780_v24, %v757_v23  ;;  %v788_v27 = vadd.f32 %v778_v25, %v756_v14 }
 0x326   : > { %797 = vst.msk [vmem:[#allocation4 + $0x30] sm:$0xff] %vm742_vm2, %v789_v26  ;;  %796 = vst.msk [vmem:[#allocation4 + $0x28] sm:$0xff] %vm742_vm2, %v788_v27 }
 0x327   : > { %v782_v29 = vpop.xlane.xlu0 %781 }
 0x328   : > { %v790_v30 = vadd.f32 %v782_v29, %v758_v28 }
 0x32a   : > { %798 = vst.msk [vmem:[#allocation4 + $0x38] sm:$0xff] %vm742_vm2, %v790_v30 }
 0x32b PF: > { %s2344_s23 = sld [smem:[#allocation18_spill]] }
 0x331   : > { %p1318_p9 = scmp.ne.s32.totalorder %s2344_s23, 1 }
 0x333   : > { %812 = sbr.rel (%p1318_p9) target bundleno = 1088 (0x440), region = 102 }
 0x33a   : > { %814 = sbr.rel (%p1935_p3) target bundleno = 867 (0x363), region = 106  ;;  %v815_v31 = vld [vmem:[#allocation3] sm:$0xff] (!%p1935_p3)  ;;  %v816_v35 = vld [vmem:[#allocation3 + $0x8] sm:$0xff] (!%p1935_p3)  ;;  %v817_v39 = vld [vmem:[#allocation3 + $0x10] sm:$0xff] (!%p1935_p3)  ;;  %s2345_s25 = sld [smem:[#allocation27_spill]] (!%p1935_p3)  ;;  %vm919_vm3 = vcmask (!%p1935_p3), 7168  }
 0x33b   : > { %v831_v32 = vld [vmem:[#allocation4] sm:$0xff] (!%p1935_p3)  ;;  %v2082_v34 = vmul.f32 (!%p1935_p3), 0.001953125, %v815_v31  ;;  %v832_v36 = vld [vmem:[#allocation4 + $0x8] sm:$0xff] (!%p1935_p3)  ;;  %v2084_v37 = vmul.f32 (!%p1935_p3), 0.001953125, %v816_v35  ;;  %v2087_v42 = vmul.f32 (!%p1935_p3), 0.001953125, %v817_v39  ;;  %v833_v43 = vld [vmem:[#allocation4 + $0x10] sm:$0xff] (!%p1935_p3) }
 0x33c   : > { %v847_v33 = vld [vmem:[#allocation5] sm:$0xff] (!%p1935_p3)  ;;  %v848_v38 = vld [vmem:[#allocation5 + $0x8] sm:$0xff] (!%p1935_p3)  ;;  %v839_v40 = vmul.f32 (!%p1935_p3), 0.001953125, %v831_v32  ;;  %v849_v44 = vld [vmem:[#allocation5 + $0x10] sm:$0xff] (!%p1935_p3)  ;;  %v840_v45 = vmul.f32 (!%p1935_p3), 0.001953125, %v832_v36  ;;  %v841_v46 = vmul.f32 (!%p1935_p3), 0.001953125, %v833_v43 }
 0x33d   : > { %v855_v41 = vsub.f32 (!%p1935_p3), %v2082_v34, %v847_v33  ;;  %v856_v48 = vsub.f32 (!%p1935_p3), %v2084_v37, %v848_v38  ;;  %v818_v49 = vld [vmem:[#allocation3 + $0x18] sm:$0xff] (!%p1935_p3)  ;;  %v857_v50 = vsub.f32 (!%p1935_p3), %v2087_v42, %v849_v44  ;;  %v819_v58 = vld [vmem:[#allocation3 + $0x20] sm:$0xff] (!%p1935_p3)  ;;  %v820_v60 = vld [vmem:[#allocation3 + $0x28] sm:$0xff] (!%p1935_p3)  ;;  %s2346_s10 = sld [smem:[#allocation28_spill]] (!%p1935_p3) }
 0x33e   : > { %v834_v52 = vld [vmem:[#allocation4 + $0x18] sm:$0xff] (!%p1935_p3)  ;;  %v2091_v55 = vmul.f32 (!%p1935_p3), 0.001953125, %v818_v49  ;;  %v835_v56 = vld [vmem:[#allocation4 + $0x20] sm:$0xff] (!%p1935_p3)  ;;  %v2093_v51 = vmul.f32 (!%p1935_p3), 0.001953125, %v819_v58  ;;  %v2096_v0 = vmul.f32 (!%p1935_p3), 0.001953125, %v820_v60  ;;  %v836_v1 = vld [vmem:[#allocation4 + $0x28] sm:$0xff] (!%p1935_p3) }
 0x33f   : > { %v850_v53 = vld [vmem:[#allocation5 + $0x18] sm:$0xff] (!%p1935_p3)  ;;  %v863_v54 = vmul.f32 (!%p1935_p3), %v855_v41, %v855_v41  ;;  %v864_v59 = vmul.f32 (!%p1935_p3), %v856_v48, %v856_v48  ;;  %v842_v47 = vmul.f32 (!%p1935_p3), 0.001953125, %v834_v52  ;;  %v851_v57 = vld [vmem:[#allocation5 + $0x20] sm:$0xff] (!%p1935_p3)  ;;  %v865_v62 = vmul.f32 (!%p1935_p3), %v857_v50, %v857_v50  ;;  %v852_v2 = vld [vmem:[#allocation5 + $0x28] sm:$0xff] (!%p1935_p3) }
 0x340   : > { %v858_v63 = vsub.f32 (!%p1935_p3), %v2091_v55, %v850_v53  ;;  %v843_v4 = vmul.f32 (!%p1935_p3), 0.001953125, %v835_v56  ;;  %v859_v5 = vsub.f32 (!%p1935_p3), %v2093_v51, %v851_v57  ;;  %v844_v6 = vmul.f32 (!%p1935_p3), 0.001953125, %v836_v1  ;;  %v821_v7 = vld [vmem:[#allocation3 + $0x30] sm:$0xff] (!%p1935_p3)  ;;  %v822_v15 = vld [vmem:[#allocation3 + $0x38] sm:$0xff] (!%p1935_p3)  ;;  %v887_v52 = vld [vmem:[%s2345_s25] sm:$0xff] (!%p1935_p3) }
 0x341   : > { %v871_v61 = vsub.f32 %v839_v40, %v863_v54  ;;  %v872_v3 = vsub.f32 %v840_v45, %v864_v59  ;;  %v837_v8 = vld [vmem:[#allocation4 + $0x30] sm:$0xff]  ;;  %v873_v10 = vsub.f32 %v841_v46, %v865_v62  ;;  %v860_v12 = vsub.f32 %v2096_v0, %v852_v2  ;;  %v838_v14 = vld [vmem:[#allocation4 + $0x38] sm:$0xff]  ;;  %v888_v54 = vld [vmem:[%s2345_s25 + $0x8] sm:$0xff] }
 0x342   : > { %v866_v11 = vmul.f32 %v858_v63, %v858_v63  ;;  %v853_v13 = vld [vmem:[#allocation5 + $0x30] sm:$0xff]  ;;  %v867_v17 = vmul.f32 %v859_v5, %v859_v5  ;;  %v2100_v18 = vmul.f32 0.001953125, %v821_v7  ;;  %v845_v19 = vmul.f32 0.001953125, %v837_v8  ;;  %v854_v28 = vld [vmem:[#allocation5 + $0x38] sm:$0xff]  ;;  %v891_v63 = vld [vmem:[%s2345_s25 + $0x20] sm:$0xff] }
 0x343   : > { %v879_v9 = vmax.f32 %v871_v61, 0.0  ;;  %v880_v16 = vmax.f32 %v872_v3, 0.0  ;;  %v881_v21 = vmax.f32 %v873_v10, 0.0  ;;  %v868_v23 = vmul.f32 %v860_v12, %v860_v12  ;;  %v889_v50 = vld [vmem:[%s2345_s25 + $0x10] sm:$0xff]  ;;  %v890_v60 = vld [vmem:[%s2345_s25 + $0x18] sm:$0xff]  ;;  %s2347_s17 = smov %s2346_s10  ;;  %v928_v61 = vld [vmem:[%s2346_s10] sm:$0xff] }
 0x344   : > { %v874_v22 = vsub.f32 %v842_v47, %v866_v11  ;;  %v875_v25 = vsub.f32 %v843_v4, %v867_v17  ;;  %v861_v26 = vsub.f32 %v2100_v18, %v853_v13  ;;  %v2103_v27 = vmul.f32 0.001953125, %v822_v15  ;;  %v929_v2 = vld [vmem:[%s2347_s17 + $0x8] sm:$0xff]  ;;  %v931_v13 = vld [vmem:[%s2347_s17 + $0x18] sm:$0xff]  ;;  %v893_v15 = vld [vmem:[%s2345_s25 + $0x30] sm:$0xff] }
 0x345   : > { %v895_v20 = vadd.f32 1e-05, %v879_v9  ;;  %v896_v24 = vadd.f32 1e-05, %v880_v16  ;;  %v897_v29 = vadd.f32 1e-05, %v881_v21  ;;  %v876_v31 = vsub.f32 %v844_v6, %v868_v23 }
 0x346   : > { %v882_v30 = vmax.f32 %v874_v22, 0.0  ;;  %v883_v32 = vmax.f32 %v875_v25, 0.0  ;;  %v869_v33 = vmul.f32 %v861_v26, %v861_v26  ;;  %v846_v35 = vmul.f32 0.001953125, %v838_v14  ;;  %v892_v4 = vld [vmem:[%s2345_s25 + $0x28] sm:$0xff]  ;;  %v930_v6 = vld [vmem:[%s2347_s17 + $0x10] sm:$0xff]  ;;  %v894_v14 = vld [vmem:[%s2345_s25 + $0x38] sm:$0xff] }
 0x347   : > { %1516 = vrsqrt.f32 %v895_v20  ;;  %v884_v38 = vmax.f32 %v876_v31, 0.0  ;;  %v862_v39 = vsub.f32 %v2103_v27, %v854_v28  ;;  %v933_v20 = vld [vmem:[%s2347_s17 + $0x28] sm:$0xff]  ;;  %v934_v25 = vld [vmem:[%s2347_s17 + $0x30] sm:$0xff] }
 0x348   : > { %1518 = vrsqrt.f32 %v896_v24  ;;  %v898_v36 = vadd.f32 1e-05, %v882_v30  ;;  %v899_v40 = vadd.f32 1e-05, %v883_v32  ;;  %v877_v41 = vsub.f32 %v845_v19, %v869_v33  ;;  %v935_v30 = vld [vmem:[%s2347_s17 + $0x38] sm:$0xff] }
 0x349   : > { %1520 = vrsqrt.f32 %v897_v29  ;;  %v900_v43 = vadd.f32 1e-05, %v884_v38  ;;  %v870_v44 = vmul.f32 %v862_v39, %v862_v39 }
 0x34a   : > { %1522 = vrsqrt.f32 %v898_v36  ;;  %v885_v45 = vmax.f32 %v877_v41, 0.0 }
 0x34b   : > { %1524 = vrsqrt.f32 %v899_v40  ;;  %v878_v48 = vsub.f32 %v846_v35, %v870_v44 }
 0x34c   : > { %1526 = vrsqrt.f32 %v900_v43  ;;  %v901_v49 = vadd.f32 1e-05, %v885_v45 }
 0x34d   : > { %v886_v53 = vmax.f32 %v878_v48, 0.0 }
 0x34e   : > { %1528 = vrsqrt.f32 %v901_v49 }
 0x34f   : > { %v902_v58 = vadd.f32 1e-05, %v886_v53 }
 0x351   : > { %v1517_v46 = vpop.eup %1516  ;;  %1530 = vrsqrt.f32 %v902_v58 }
 0x352   : > { %v1519_v56 = vpop.eup %1518  ;;  %v911_v59 = vmul.f32 %v1517_v46, %v887_v52 }
 0x353   : > { %v1521_v47 = vpop.eup %1520  ;;  %v912_v57 = vmul.f32 %v1519_v56, %v888_v54 }
 0x354   : > { %920 = vst.msk [vmem:[#allocation6] sm:$0xff] %vm919_vm3, %v911_v59  ;;  %v913_v62 = vmul.f32 %v1521_v47, %v889_v50  ;;  %v936_v1 = vmul.f32 %v911_v59, %v2082_v34  ;;  %v1523_v3 = vpop.eup %1522 }
 0x355   : > { %921 = vst.msk [vmem:[#allocation6 + $0x8] sm:$0xff] %vm919_vm3, %v912_v57  ;;  %v937_v5 = vmul.f32 %v912_v57, %v2084_v37  ;;  %v1525_v7 = vpop.eup %1524  ;;  %v914_v34 = vmul.f32 %v1523_v3, %v890_v60 }
 0x356   : > { %922 = vst.msk [vmem:[#allocation6 + $0x10] sm:$0xff] %vm919_vm3, %v913_v62  ;;  %v944_v8 = vsub.f32 %v928_v61, %v936_v1  ;;  %v938_v9 = vmul.f32 %v913_v62, %v2087_v42  ;;  %v1527_v10 = vpop.eup %1526  ;;  %v915_v11 = vmul.f32 %v1525_v7, %v891_v63  ;;  %v932_v42 = vld [vmem:[%s2347_s17 + $0x20] sm:$0xff] }
 0x357   : > { %v945_v12 = vsub.f32 %v929_v2, %v937_v5  ;;  %923 = vst.msk [vmem:[#allocation6 + $0x18] sm:$0xff] %vm919_vm3, %v914_v34  ;;  %v916_v37 = vmul.f32 %v1527_v10, %v892_v4  ;;  %v939_v17 = vmul.f32 %v914_v34, %v2091_v55 }
 0x358   : > { %952 = vst.msk [vmem:[#allocation7] sm:$0xff] %vm919_vm3, %v944_v8  ;;  %v946_v16 = vsub.f32 %v930_v6, %v938_v9  ;;  %924 = vst.msk [vmem:[#allocation6 + $0x20] sm:$0xff] %vm919_vm3, %v915_v11  ;;  %v940_v19 = vmul.f32 %v915_v11, %v2093_v51  ;;  %v1529_v21 = vpop.eup %1528 }
 0x359   : > { %953 = vst.msk [vmem:[#allocation7 + $0x8] sm:$0xff] %vm919_vm3, %v945_v12  ;;  %925 = vst.msk [vmem:[#allocation6 + $0x28] sm:$0xff] %vm919_vm3, %v916_v37  ;;  %v947_v55 = vsub.f32 %v931_v13, %v939_v17  ;;  %v941_v22 = vmul.f32 %v916_v37, %v2096_v0  ;;  %v917_v23 = vmul.f32 %v1529_v21, %v893_v15 }
 0x35a   : > { %954 = vst.msk [vmem:[#allocation7 + $0x10] sm:$0xff] %vm919_vm3, %v946_v16  ;;  %v948_v24 = vsub.f32 %v932_v42, %v940_v19 }
 0x35b   : > { %955 = vst.msk [vmem:[#allocation7 + $0x18] sm:$0xff] %vm919_vm3, %v947_v55  ;;  %v949_v51 = vsub.f32 %v933_v20, %v941_v22  ;;  %v1531_v26 = vpop.eup %1530  ;;  %926 = vst.msk [vmem:[#allocation6 + $0x30] sm:$0xff] %vm919_vm3, %v917_v23  ;;  %v942_v0 = vmul.f32 %v917_v23, %v2100_v18 }
 0x35c   : > { %956 = vst.msk [vmem:[#allocation7 + $0x20] sm:$0xff] %vm919_vm3, %v948_v24  ;;  %v918_v28 = vmul.f32 %v1531_v26, %v894_v14 }
 0x35d   : > { %957 = vst.msk [vmem:[#allocation7 + $0x28] sm:$0xff] %vm919_vm3, %v949_v51  ;;  %v950_v29 = vsub.f32 %v934_v25, %v942_v0 }
 0x35e   : > { %927 = vst.msk [vmem:[#allocation6 + $0x38] sm:$0xff] %vm919_vm3, %v918_v28  ;;  %v943_v31 = vmul.f32 %v918_v28, %v2103_v27 }
 0x35f   : > { %958 = vst.msk [vmem:[#allocation7 + $0x30] sm:$0xff] %vm919_vm3, %v950_v29 }
 0x360   : > { %v951_v32 = vsub.f32 %v935_v30, %v943_v31 }
 0x362   : > { %959 = vst.msk [vmem:[#allocation7 + $0x38] sm:$0xff] %vm919_vm3, %v951_v32 }
 0x363 PF: > { %v972_v33 = vld [vmem:[#allocation6 + $0x10] sm:$0xff]  ;;  %v970_v18 = vld [vmem:[#allocation6] sm:$0xff]  ;;  %v1703_v35 = vmov 0   ;;  %v971_v38 = vld [vmem:[#allocation6 + $0x8] sm:$0xff]  ;;  %s2348_s26 = sld [smem:[#allocation29_spill]]  ;;  %s1319_s29 = sshll.u32 %s1931_s3, 6 }
 0x364   : > { %1533 = vset.pattern.permute.xlu1 %v1703_v35  ;;  %1532 = vset.pattern.permute.xlu0 %v1703_v35  ;;  %v1026_v36 = vld [vmem:[#allocation7] sm:$0xff]  ;;  %v973_v39 = vld [vmem:[#allocation6 + $0x18] sm:$0xff]  ;;  %v1027_v40 = vld [vmem:[#allocation7 + $0x8] sm:$0xff]  ;;  %s2203_s5 = scalar_lea.vmem [#allocation2], %s1319_s29 }
 0x365   : > { %990 = vperm.xlu1 %1533, %v972_v33   ;;  %980 = vperm.xlu0 %1532, %v970_v18   ;;  %v974_v27 = vld [vmem:[#allocation6 + $0x20] sm:$0xff]  ;;  %v1028_v41 = vld [vmem:[#allocation7 + $0x10] sm:$0xff]  ;;  %v1029_v44 = vld [vmem:[#allocation7 + $0x18] sm:$0xff] }
 0x366   : > { %v975_v45 = vld [vmem:[#allocation6 + $0x28] sm:$0xff]  ;;  %v1030_v52 = vld [vmem:[#allocation7 + $0x20] sm:$0xff]  ;;  %v976_v54 = vld [vmem:[#allocation6 + $0x30] sm:$0xff] }
 0x367   : > { %v1031_v53 = vld [vmem:[#allocation7 + $0x28] sm:$0xff]  ;;  %v977_v46 = vld [vmem:[#allocation6 + $0x38] sm:$0xff]  ;;  %v1032_v56 = vld [vmem:[#allocation7 + $0x30] sm:$0xff] }
 0x368   : > { %v1159_v61 = vld [vmem:[#allocation8] sm:$0x1]  ;;  %v963_v10 = vld [vmem:[%s2203_s5 + $0x8] sm:$0xff]  ;;  %v964_v11 = vld [vmem:[%s2203_s5 + $0x10] sm:$0xff] }
 0x369   : > { %1036 = vperm.xlu1 %1533, %v1026_v36   ;;  %985 = vperm.xlu0 %1532, %v971_v38   ;;  %s2349_s20 = smov %s2348_s26  ;;  %v1090_v43 = vld [vmem:[%s2348_s26] sm:$0xff]  ;;  %v1033_v47 = vld [vmem:[#allocation7 + $0x38] sm:$0xff]  ;;  %v967_v51 = vld [vmem:[%s2203_s5 + $0x28] sm:$0xff] }
 0x36a   : > { %v1091_v48 = vld [vmem:[%s2349_s20 + $0x8] sm:$0xff]  ;;  %v1092_v49 = vld [vmem:[%s2349_s20 + $0x10] sm:$0xff]  ;;  %v1093_v50 = vld [vmem:[%s2349_s20 + $0x18] sm:$0xff] }
 0x36b   : > { %v1094_v58 = vld [vmem:[%s2349_s20 + $0x20] sm:$0xff]  ;;  %v1095_v59 = vld [vmem:[%s2349_s20 + $0x28] sm:$0xff]  ;;  %v1097_v57 = vld [vmem:[%s2349_s20 + $0x38] sm:$0xff] }
 0x36c   : > { %v1096_v60 = vld [vmem:[%s2349_s20 + $0x30] sm:$0xff]  ;;  %v962_v12 = vld [vmem:[%s2203_s5] sm:$0xff]  ;;  %v965_v42 = vld [vmem:[%s2203_s5 + $0x18] sm:$0xff] }
 0x36d   : > { %995 = vperm.xlu1 %1533, %v973_v39   ;;  %1041 = vperm.xlu0 %1532, %v1027_v40   ;;  %v966_v21 = vld [vmem:[%s2203_s5 + $0x20] sm:$0xff]  ;;  %v968_v36 = vld [vmem:[%s2203_s5 + $0x30] sm:$0xff] }
 0x371   : > { %1000 = vperm.xlu1 %1533, %v974_v27   ;;  %1046 = vperm.xlu0 %1532, %v1028_v41   ;;  %v969_v27 = vld [vmem:[%s2203_s5 + $0x38] sm:$0xff] }
 0x375   : > { %1100 = vperm.xlu1 %1533, %v1090_v43   ;;  %1051 = vperm.xlu0 %1532, %v1029_v44  }
 0x379   : > { %1005 = vperm.xlu1 %1533, %v975_v45   ;;  %1105 = vperm.xlu0 %1532, %v1091_v48  }
 0x37d   : > { %1110 = vperm.xlu1 %1533, %v1092_v49   ;;  %1056 = vperm.xlu0 %1532, %v1030_v52  }
 0x381   : > { %1061 = vperm.xlu1 %1533, %v1031_v53   ;;  %1010 = vperm.xlu0 %1532, %v976_v54  }
 0x385   : > { %1015 = vperm.xlu1 %1533, %v977_v46   ;;  %1115 = vperm.xlu0 %1532, %v1093_v50  }
 0x389   : > { %1120 = vperm.xlu1 %1533, %v1094_v58   ;;  %1066 = vperm.xlu0 %1532, %v1032_v56  }
 0x38d   : > { %1125 = vperm.xlu1 %1533, %v1095_v59   ;;  %1071 = vperm.xlu0 %1532, %v1033_v47  }
 0x391   : > { %1135 = vperm.xlu1 %1533, %v1097_v57   ;;  %1130 = vperm.xlu0 %1532, %v1096_v60  }
 0x395   : > { %1162 = vperm.xlu0 %1532, %v1159_v61  }
 0x3e4   : > { %v991_v62 = vpop.permute.xlu1 %990  ;;  %v981_v63 = vpop.permute.xlu0 %980 }
 0x3e5   : > { %v1020_v16 = vmul.f32 %v991_v62, %v964_v11  ;;  %v1018_v17 = vmul.f32 %v981_v63, %v962_v12 }
 0x3e8   : > { %v1037_v1 = vpop.permute.xlu1 %1036  ;;  %v986_v2 = vpop.permute.xlu0 %985 }
 0x3e9   : > { %v1019_v13 = vmul.f32 %v986_v2, %v963_v10  ;;  %v1074_v20 = vadd.f32 %v1037_v1, %v1018_v17 }
 0x3eb   : > { %v1082_v0 = vmax.f32 %v1074_v20, 0.0 }
 0x3ec   : > { %v996_v3 = vpop.permute.xlu1 %995  ;;  %v1042_v4 = vpop.permute.xlu0 %1041 }
 0x3ed   : > { %v1075_v19 = vadd.f32 %v1042_v4, %v1019_v13  ;;  %v1021_v14 = vmul.f32 %v996_v3, %v965_v42 }
 0x3ef   : > { %v1083_v24 = vmax.f32 %v1075_v19, 0.0 }
 0x3f0   : > { %v1001_v5 = vpop.permute.xlu1 %1000  ;;  %v1047_v6 = vpop.permute.xlu0 %1046 }
 0x3f1   : > { %v1076_v55 = vadd.f32 %v1047_v6, %v1020_v16  ;;  %v1022_v25 = vmul.f32 %v1001_v5, %v966_v21  ;;  %v1165_v6 = vlaneseq }
 0x3f3   : > { %v1084_v28 = vmax.f32 %v1076_v55, 0.0 }
 0x3f4   : > { %v1101_v7 = vpop.permute.xlu1 %1100  ;;  %v1052_v34 = vpop.permute.xlu0 %1051 }
 0x3f5   : > { %v1077_v26 = vadd.f32 %v1052_v34, %v1021_v14  ;;  %v1138_v18 = vmul.f32 %v1101_v7, %v1082_v0 }
 0x3f7   : > { %v1085_v38 = vmax.f32 %v1077_v26, 0.0 }
 0x3f8   : > { %v1006_v8 = vpop.permute.xlu1 %1005  ;;  %v1106_v9 = vpop.permute.xlu0 %1105 }
 0x3f9   : > { %v1139_v29 = vmul.f32 %v1106_v9, %v1083_v24  ;;  %v1023_v32 = vmul.f32 %v1006_v8, %v967_v51  ;;  %v1166_v8 = vshrl.u32 %v1165_v6, 7 }
 0x3fb   : > { %v1146_v40 = vadd.f32 %v1139_v29, %v1138_v18  ;;  %v1167_v10 = vsub.s32 0, %v1166_v8 }
 0x3fc   : > { %v1111_v37 = vpop.permute.xlu1 %1110  ;;  %v1057_v15 = vpop.permute.xlu0 %1056 }
 0x3fd   : > { %v1078_v33 = vadd.f32 %v1057_v15, %v1022_v25  ;;  %v1140_v35 = vmul.f32 %v1111_v37, %v1084_v28 }
 0x3ff   : > { %v1086_v44 = vmax.f32 %v1078_v33, 0.0  ;;  %v1147_v49 = vadd.f32 %v1146_v40, %v1140_v35 }
 0x400   : > { %v1062_v22 = vpop.permute.xlu1 %1061  ;;  %v1011_v23 = vpop.permute.xlu0 %1010 }
 0x401   : > { %v1079_v39 = vadd.f32 %v1062_v22, %v1023_v32  ;;  %v1024_v45 = vmul.f32 %v1011_v23, %v968_v36 }
 0x403   : > { %v1087_v52 = vmax.f32 %v1079_v39, 0.0 }
 0x404   : > { %v1016_v30 = vpop.permute.xlu1 %1015  ;;  %v1116_v31 = vpop.permute.xlu0 %1115 }
 0x405   : > { %v1141_v48 = vmul.f32 %v1116_v31, %v1085_v38  ;;  %v1025_v53 = vmul.f32 %v1016_v30, %v969_v27 }
 0x407   : > { %v1148_v56 = vadd.f32 %v1147_v49, %v1141_v48 }
 0x408   : > { %v1121_v41 = vpop.permute.xlu1 %1120  ;;  %v1067_v43 = vpop.permute.xlu0 %1066 }
 0x409   : > { %v1142_v54 = vmul.f32 %v1121_v41, %v1086_v44  ;;  %v1080_v46 = vadd.f32 %v1067_v43, %v1024_v45 }
 0x40b   : > { %v1149_v57 = vadd.f32 %v1148_v56, %v1142_v54  ;;  %v1088_v60 = vmax.f32 %v1080_v46, 0.0 }
 0x40c   : > { %v1126_v50 = vpop.permute.xlu1 %1125  ;;  %v1072_v58 = vpop.permute.xlu0 %1071 }
 0x40d   : > { %v1143_v59 = vmul.f32 %v1126_v50, %v1087_v52  ;;  %v1081_v47 = vadd.f32 %v1072_v58, %v1025_v53 }
 0x40f   : > { %v1089_v61 = vmax.f32 %v1081_v47, 0.0  ;;  %v1150_v1 = vadd.f32 %v1149_v57, %v1143_v59 }
 0x410   : > { %v1136_v62 = vpop.permute.xlu1 %1135  ;;  %v1131_v63 = vpop.permute.xlu0 %1130 }
 0x411   : > { %v1144_v2 = vmul.f32 %v1131_v63, %v1088_v60  ;;  %v1145_v3 = vmul.f32 %v1136_v62, %v1089_v61 }
 0x413   : > { %v1151_v4 = vadd.f32 %v1150_v1, %v1144_v2 }
 0x414   : > { %v1163_v12 = vpop.permute.xlu0 %1162 }
 0x415   : > { %v1152_v5 = vadd.f32 %v1151_v4, %v1145_v3  ;;  %v1168_v15 = vrot.slane %v1163_v12, %v1167_v10 }
 0x417   : > { %v1153_v7 = vrot.slane %v1152_v5, 4 }
 0x419   : > { %v1154_v34 = vadd.f32 %v1153_v7, %v1152_v5 }
 0x41b   : > { %v1155_v9 = vrot.slane %v1154_v34, 2 }
 0x41d   : > { %v1156_v11 = vadd.f32 %v1155_v9, %v1154_v34 }
 0x41f   : > { %v1157_v13 = vrot.slane %v1156_v11, 1 }
 0x421   : > { %v1158_v37 = vadd.f32 %v1157_v13, %v1156_v11 }
 0x423   : > { %v1169_v16 = vadd.f32 %v1168_v15, %v1158_v37 }
 0x425   : > { %v1320_v17 = vmul.f32 -1.442695, %v1169_v16 }
 0x427   : > { %1534 = vpow2.f32 %v1320_v17 }
 0x431   : > { %v1535_v42 = vpop.eup %1534 }
 0x432   : > { %v1173_v19 = vadd.f32 1.0, %v1535_v42 }
 0x434   : > { %1536 = vrcp.f32 %v1173_v19 }
 0x43e   : > { %v1537_v20 = vpop.eup %1536 }
 0x43f   : > { %1176 = vst [vmem:[%s1941_s7] sm:$0x1] %v1537_v20 }
 0x440 PF: > { %s2350_s3 = sld [smem:[#allocation18_spill]]  ;;  %s2351_s4 = sld [smem:[#allocation17_spill]] }
 0x441   : > { %s2352_s21 = sld [smem:[#allocation23_spill]]  ;;  %s1194_s19 = sshll.u32 %s1941_s7, 4  ;;  %s2219_s19 = int_to_ptr.vmem [resolvable:$true] %s1194_s19 }
 0x442   : > { %s2353_s29 = sld [smem:[#allocation30_spill]]  ;;  %s2355_s0 = sand.u32 1, %s1656_s27  }
 0x443   : > { %s1178_s1 = scalar_lea.sflag [#allocation12], %s2355_s0  ;;  %s1566_s15 = scalar_lea.vmem %s2219_s19, 16 }
 0x444   : > { %p1567_p12 = scmp.ne.s32.totalorder %s2219_s19, %s1566_s15 }
 0x446   : > { %s1184_s22 = smul.u32 %s1676_s9, %s2350_s3  ;;  %s1704_s9 = smov [#allocation13]  }
 0x447   : > { %s1185_s24 = smul.u32 %s2351_s4, %s2350_s3  ;;  %p2356_p13 = scmp.ne.s32.totalorder %s2352_s21, 0 }
 0x448   : > { %s1321_s14 = sshll.u32 %s1184_s22, 1  ;;  %s2354_s5 = smov %s2353_s29 }
 0x449   : > { %s1190_s11 = sadd.s32 %s1321_s14, %s1185_s24  ;;  %p1568_p0 = pnand %p1567_p12, %p2356_p13 }
 0x44a   : > { %s1322_s26 = sshll.u32 %s1190_s11, 4  ;;  %s1570_s7 = sshll.u32 %s1704_s9, 4  ;;  %s1571_s7 = int_to_ptr.vmem [resolvable:$false] %s1570_s7 }
 0x44b   : > { %s1192_s12 = scalar_lea.hbm %s2353_s29, %s1322_s26  ;;  %p1569_p1 = pneg %p1568_p0 }
 0x44c   : > { %s1572_s3 = scalar_lea.vmem %s1571_s7, 32  ;;  %p1573_p5 = scmp.lt.s32.totalorder %s2219_s19, %s1571_s7 }
 0x44d   : > { %p1574_p7 = scmp.lt.s32.totalorder %s1572_s3, %s1566_s15 }
 0x44f   : > { %p1575_p10 = por %p1574_p7, %p1573_p5 }
 0x451   : > { %p1576_p4 = pnand %p1575_p10, %p1569_p1 }
 0x453   : > { %1579 = shalt.err (!%p1576_p4)
}
 0x454   : > { %s1580_s4 = scalar_lea.hbm %s1192_s12, 16  ;;  %s1584_s24 = scalar_lea.hbm %s2354_s5, 64 }
 0x455   : > { %p1581_p8 = scmp.ne.s32.totalorder %s1192_s12, %s1580_s4  ;;  %p1585_p3 = scmp.lt.u32.totalorder %s1192_s12, %s2354_s5 }
 0x456   : > { %p1586_p6 = scmp.lt.u32.totalorder %s1584_s24, %s1580_s4  ;;  %p1588_p12 = scmp.lt.u32.totalorder %s1580_s4, %s1192_s12 }
 0x457   : > { %p1582_p11 = pnand %p1581_p8, %p2356_p13 }
 0x458   : > { %p1587_p9 = por %p1586_p6, %p1585_p3 }
 0x459   : > { %p1583_p2 = pneg %p1582_p11 }
 0x45a   : > { %p1589_p0 = por %p1588_p12, %p1587_p9 }
 0x45c   : > { %p1590_p1 = pnand %p1589_p0, %p1583_p2 }
 0x45e   : > { %1593 = shalt.err (!%p1590_p1)
}
 0x45f   : > { %1397 = dma.vmem_to_hbm [thread:$0]  (%p2356_p13), %s2219_s19, 16, %s1192_s12, %s1178_s1  }
 0x460 PF: > { %s2357_s15 = sld [smem:[#allocation16_spill]]  ;;  %p1409_p5 = scmp.ge.s32.totalorder %s1696_s13, 2 }
 0x461   : > { %p2358_p7 = scmp.ne.s32.totalorder %s2329_s2, 0 }
 0x463   : > { %p1404_p10 = pnand %p1409_p5, %p2358_p7 }
 0x466   : > { %s1206_s26 = sand.u32 1, %s2357_s15  }
 0x467   : > { %s1207_s10 = scalar_lea.sflag [#allocation12], %s1206_s26 }
 0x468   : > { %1647 = dma.done.wait (!%p1404_p10), %s1207_s10, 16  }
 0x469   : > { %1649 = vsyncadd (!%p1404_p10), %s1207_s10, 4294967280  ;;  %s23_s13 = sadd.s32 1, %s1696_s13   ;;  %s2359_s1 = sld [smem:[#allocation19_spill]] }
 0x46a   : > { %p20_p4 = scmp.ge.s32.totalorder %s23_s13, 10   ;;  %s2360_s9 = sld [smem:[#allocation20_spill]] }
 0x46b   : > { %s2361_s10 = sld [smem:[#allocation21_spill]]  ;;  %s2362_s11 = sld [smem:[#allocation22_spill]] }
 0x46c   : > { %s2363_s26 = smov %s1656_s27  ;;  %s2364_s27 = smov %s1660_s28 }
 0x46d   : > { %s2365_s28 = smov %s1873_s6  ;;  %s2366_s29 = smov %s1668_s30 }
 0x46e   : > { %s2367_s30 = smov %s1870_s8  ;;  %s2369_s6 = smov %s2372_s16 }
 0x46f   : > { %s2368_s8 = smov %s2359_s1  ;;  %s2370_s12 = smov %s2380_s18 }
 0x470   :  { %22 = sbr.rel (!%p20_p4) target bundleno = 16 (0x10), region = 149 }
 0x477   :  { %1211 = vsyncpa [#allocation11], 1 }
 0x478   :  { %1213 = vsyncpa [#allocation11 + $0x1], 1 }
 0x479   :  { %1214 = vsyncpa [#allocation12], 1 }
 0x47a   :  { %1216 = vsyncpa [#allocation12 + $0x1], 1 }

</bundles_post_ra>
